<compile_context>
chip_gen: v7x
topology: tpu7x:2x2x1
jax: 0.10.0
libtpu: 0.0.40
codegen_flags: <defaults>
</compile_context>

<pallas_src>
import functools

import jax
import jax.numpy as jnp
from jax.experimental import pallas as pl
from jax.experimental.pallas import tpu as pltpu

IN_FEATURES = 2048   # fixed by nn.Linear(2048, 512)
HIDDEN = 512
LANE = 128
SUBLANE = 8


def _round_up(x, m):
    return (x + m - 1) // m * m


def _cdiv(a, b):
    return (a + b - 1) // b


def _vmem_capacity_bytes():
    # Generation-aware VMEM capacity (128 MiB v5e/v6e, 64 MiB per-TC v7x).
    # Fall back to the conservative 64 MiB if the query is unavailable.
    try:
        return int(pltpu.get_tpu_info().vmem_capacity_bytes)
    except Exception:
        return 64 << 20


def _head_kernel(x_ref, a_ref, w1_ref, b1_ref, w2_ref, b2_ref, o_ref, acc_ref, *, inv_hw):
    # x_ref:  (tile_n, tile_c*hw)   lane-dense slab of the (N, C*HW) view (k-th channel slice)
    # a_ref:  (tile_c*hw, tile_c)   block-diagonal pool-sum matrix (resident, constant)
    # w1_ref: (tile_c, HIDDEN)      k-th row-slice of w1 (pipelined)
    # b1_ref: (1, HIDDEN)
    # w2_ref: (HIDDEN, out_cols)    out_cols = round_up(num_classes, 128)
    # b2_ref: (1, out_cols)
    # o_ref:  (tile_n, out_cols)    resident across the k axis, written at the last k
    # acc_ref:(tile_n, HIDDEN) f32  partial-sum of the first Linear
    k = pl.program_id(1)

    @pl.when(k == 0)
    def _():
        acc_ref[...] = jnp.zeros_like(acc_ref)

    # AdaptiveAvgPool2d((1,1)) on the MXU: sum each channel's spatial window via the
    # block-diagonal ones matrix, then scale by 1/hw in f32 (exact mean semantics).
    pooled = jnp.dot(x_ref[...], a_ref[...],
                     preferred_element_type=jnp.float32) * inv_hw          # (tile_n, tile_c)

    # Partial Linear(2048, 512): accumulate this channel slice in f32.
    acc_ref[...] += jnp.dot(pooled, w1_ref[...].astype(jnp.float32),
                            preferred_element_type=jnp.float32)

    @pl.when(k == pl.num_programs(1) - 1)
    def _():
        # ReLU (Dropout(0.5) is identity in eval/inference mode) + Linear(512, num_classes).
        h = jnp.maximum(acc_ref[...] + b1_ref[...].astype(jnp.float32), 0.0)
        out = jnp.dot(h, w2_ref[...].astype(jnp.float32),
                      preferred_element_type=jnp.float32)
        o_ref[...] = (out + b2_ref[...].astype(jnp.float32)).astype(o_ref.dtype)


def classification_head(x_nchw, w1, b1, w2, b2, *, tile_c=LANE, vmem_fraction=0.75):
    """x_nchw: (N, 2048, H, W).  w1: (2048, 512), b1: (512,), w2: (512, nc), b2: (nc,).

    Returns (N, num_classes) float32.  x / w1 may be bfloat16 (recommended when HBM-bound);
    all accumulation stays float32.  (PyTorch nn.Linear weights are (out, in): pass w.T.)
    """
    n, c, h, w = x_nchw.shape
    assert c == IN_FEATURES, f"expected {IN_FEATURES} channels, got {c}"
    assert w1.shape == (IN_FEATURES, HIDDEN) and w2.shape[0] == HIDDEN
    num_classes = w2.shape[1]
    hw = h * w

    # Free reshape of contiguous NCHW -> (N, C*H*W): no relayout / no HBM copy.
    x = x_nchw.reshape(n, IN_FEATURES * hw)

    # Pad the batch only to a sublane multiple (no-op for typical batch sizes); ragged
    # tile_n-level final blocks are handled by Pallas masking, so x is not copied for padding.
    n_pad = _round_up(max(n, SUBLANE), SUBLANE)
    if n_pad != n:
        x = jnp.pad(x, ((0, n_pad - n), (0, 0)))

    # Channel-slice width: keep the x block's minor dim (tile_c*hw) a multiple of 128 lanes
    # and keep the pool-sum matrix small for large feature maps.
    a_cap = 8 << 20
    while (tile_c > 8 and ((tile_c // 2) * hw) % LANE == 0
           and tile_c * tile_c * hw * x.dtype.itemsize > a_cap):
        tile_c //= 2
    kslice = tile_c * hw
    nk = IN_FEATURES // tile_c
    # TODO(synk): for very large odd spatial sizes (tile_c pinned at 128, hw >~ 512) split HW
    #             onto an extra "arbitrary" grid axis with partial sums instead of growing A.

    # Block-diagonal pool-sum matrix: A[c*hw + s, c] = 1  (ones are exact in any dtype).
    a = jnp.repeat(jnp.eye(tile_c, dtype=x.dtype), hw, axis=0)        # (kslice, tile_c)

    # Lane-dense output / MXU-friendly second matmul.
    out_cols = _round_up(num_classes, LANE)
    w2p = jnp.pad(w2, ((0, 0), (0, out_cols - num_classes)))
    b2p = jnp.pad(b2.reshape(1, num_classes), ((0, 0), (0, out_cols - num_classes)))
    b1r = b1.reshape(1, HIDDEN)

    # --- batch tile from the real per-row VMEM footprint and the generation's capacity ---
    f32 = 4
    a_bytes = a.size * a.dtype.itemsize
    w1_blk_bytes = tile_c * HIDDEN * w1.dtype.itemsize
    w2_bytes = w2p.size * w2p.dtype.itemsize
    b_bytes = b1r.size * b1r.dtype.itemsize + b2p.size * b2p.dtype.itemsize
    fixed_bytes = 2 * (a_bytes + w1_blk_bytes + w2_bytes + b_bytes) + (4 << 20)   # + slack
    per_row_bytes = (2 * kslice * x.dtype.itemsize          # double-buffered x block
                     + 2 * out_cols * f32                   # double-buffered output block
                     + HIDDEN * f32                         # f32 accumulator scratch
                     + (tile_c + HIDDEN + out_cols) * f32)  # in-kernel f32 temporaries
    capacity = _vmem_capacity_bytes()
    budget = int(capacity * vmem_fraction)
    tile_n = (budget - fixed_bytes) // per_row_bytes // SUBLANE * SUBLANE
    tile_n = max(SUBLANE, min(256, tile_n))
    tile_n = min(tile_n, n_pad)
    if n_pad >= 2 * SUBLANE:
        # >= 2 batch tiles so dimension_semantics="parallel" can feed both v7x TensorCores.
        tile_n = min(tile_n, _round_up(_cdiv(n_pad, 2), SUBLANE))

    grid = (_cdiv(n_pad, tile_n), nk)                       # reduction (channel) axis last
    vmem_bytes = min(fixed_bytes + tile_n * per_row_bytes, capacity)

    cost = pl.CostEstimate(
        flops=int(2 * n_pad * (IN_FEATURES * hw * tile_c        # MXU pooling
                               + IN_FEATURES * HIDDEN           # fc1
                               + HIDDEN * out_cols)),            # fc2
        transcendentals=0,
        bytes_accessed=int(x.size * x.dtype.itemsize + a_bytes
                           + w1.size * w1.dtype.itemsize + w2_bytes + b_bytes
                           + n_pad * out_cols * f32),
    )

    kernel = functools.partial(_head_kernel, inv_hw=float(1.0 / hw))

    out = pl.pallas_call(
        kernel,
        out_shape=jax.ShapeDtypeStruct((n_pad, out_cols), jnp.float32),
        grid=grid,
        in_specs=[
            pl.BlockSpec((tile_n, kslice), lambda i, k: (i, k)),     # x slab (pipelined)
            pl.BlockSpec((kslice, tile_c), lambda i, k: (0, 0)),     # pool-sum matrix (resident)
            pl.BlockSpec((tile_c, HIDDEN), lambda i, k: (k, 0)),     # w1 row-slice (pipelined)
            pl.BlockSpec((1, HIDDEN), lambda i, k: (0, 0)),          # b1 (resident)
            pl.BlockSpec((HIDDEN, out_cols), lambda i, k: (0, 0)),   # w2 padded (resident)
            pl.BlockSpec((1, out_cols), lambda i, k: (0, 0)),        # b2 padded (resident)
        ],
        out_specs=pl.BlockSpec((tile_n, out_cols), lambda i, k: (i, 0)),
        scratch_shapes=[pltpu.VMEM((tile_n, HIDDEN), jnp.float32)],
        compiler_params=pltpu.CompilerParams(
            dimension_semantics=("parallel", "arbitrary"),
            vmem_limit_bytes=int(vmem_bytes),
        ),
        cost_estimate=cost,
    )(x, a, w1, b1r, w2p, b2p)

    return out[:n, :num_classes]


def _init_params(key, num_classes):
    # Deterministic synthetic init (roughly matching nn.Linear's uniform fan-in init).
    k1, k2, k3, k4 = jax.random.split(key, 4)
    lim1 = 1.0 / (IN_FEATURES ** 0.5)
    lim2 = 1.0 / (HIDDEN ** 0.5)
    w1 = jax.random.uniform(k1, (IN_FEATURES, HIDDEN), jnp.float32, -lim1, lim1)
    b1 = jax.random.uniform(k2, (HIDDEN,), jnp.float32, -lim1, lim1)
    w2 = jax.random.uniform(k3, (HIDDEN, num_classes), jnp.float32, -lim2, lim2)
    b2 = jax.random.uniform(k4, (num_classes,), jnp.float32, -lim2, lim2)
    return w1, b1, w2, b2


if __name__ == "__main__":
    key = jax.random.PRNGKey(0)
    k_x, k_p = jax.random.split(key)

    NUM_CLASSES = 5
    # Small spatial size; channels must be 2048 to satisfy Linear(2048, 512).
    N, C, H, W = 2, IN_FEATURES, 4, 4
    x = jax.random.normal(k_x, (N, C, H, W), dtype=jnp.float32)
    w1, b1, w2, b2 = _init_params(k_p, NUM_CLASSES)

    out = classification_head(x, w1, b1, w2, b2)
    jax.block_until_ready(out)

    # Sanity check against pure-JAX reference (eval-mode dropout == identity).
    pooled_ref = jnp.mean(x, axis=(2, 3))
    h_ref = jnp.maximum(pooled_ref @ w1 + b1, 0.0)
    ref = h_ref @ w2 + b2
    assert out.shape == (N, NUM_CLASSES)
    assert jnp.allclose(out, ref, atol=1e-4, rtol=1e-4), float(jnp.max(jnp.abs(out - ref)))

    print("KERNEL_OK")
</pallas_src>

<mosaic_0001>
module attributes {stable_mosaic.version = 11 : i64} {
  func.func @_head_kernel(%arg0: i32, %arg1: i32, %arg2: memref<8x2048xf32, #tpu.memory_space<vmem>>, %arg3: memref<2048x128xf32, #tpu.memory_space<vmem>>, %arg4: memref<128x512xf32, #tpu.memory_space<vmem>>, %arg5: memref<1x512xf32, #tpu.memory_space<vmem>>, %arg6: memref<512x128xf32, #tpu.memory_space<vmem>>, %arg7: memref<1x128xf32, #tpu.memory_space<vmem>>, %arg8: memref<8x128xf32, #tpu.memory_space<vmem>>, %arg9: memref<8x512xf32, #tpu.memory_space<vmem>>) attributes {dimension_semantics = [#tpu.dimension_semantics<parallel>, #tpu.dimension_semantics<arbitrary>], iteration_bounds = array<i64: 1, 16>, scalar_prefetch = 0 : i64, scratch_operands = 1 : i64, tpu.core_type = #tpu.core_type<tc>, window_params = [{transform_indices = @transform_0, window_bounds = array<i64: 8, 2048>}, {pipeline_mode = #tpu.pipeline_mode<synchronous>, transform_indices = @transform_1, window_bounds = array<i64: 2048, 128>}, {transform_indices = @transform_2, window_bounds = array<i64: 128, 512>}, {pipeline_mode = #tpu.pipeline_mode<synchronous>, transform_indices = @transform_3, window_bounds = array<i64: 1, 512>}, {pipeline_mode = #tpu.pipeline_mode<synchronous>, transform_indices = @transform_4, window_bounds = array<i64: 512, 128>}, {pipeline_mode = #tpu.pipeline_mode<synchronous>, transform_indices = @transform_5, window_bounds = array<i64: 1, 128>}, {transform_indices = @transform_6, window_bounds = array<i64: 8, 128>}]} {
    %c0_i32 = arith.constant 0 : i32
    %0 = arith.cmpi eq, %arg1, %c0_i32 : i32
    %1 = arith.extui %0 : i1 to i32
    %c0_i32_0 = arith.constant 0 : i32
    %2 = arith.cmpi ne, %1, %c0_i32_0 : i32
    scf.if %2 {
      %cst_13 = arith.constant 0.000000e+00 : f32
      %16 = vector.broadcast %cst_13 : f32 to vector<8x512xf32>
      %c0_14 = arith.constant 0 : index
      %c0_15 = arith.constant 0 : index
      %17 = vector.load %arg9[%c0_14, %c0_15] : memref<8x512xf32, #tpu.memory_space<vmem>>, vector<8x512xf32>
      tpu.vector_store %arg9[%c0_14, %c0_15], %16 {strides = array<i32>} : memref<8x512xf32, #tpu.memory_space<vmem>>, vector<8x512xf32>,
    } else {
    }
    %c0 = arith.constant 0 : index
    %c0_1 = arith.constant 0 : index
    %3 = vector.load %arg2[%c0, %c0_1] : memref<8x2048xf32, #tpu.memory_space<vmem>>, vector<8x2048xf32>
    %c0_2 = arith.constant 0 : index
    %c0_3 = arith.constant 0 : index
    %4 = vector.load %arg3[%c0_2, %c0_3] : memref<2048x128xf32, #tpu.memory_space<vmem>>, vector<2048x128xf32>
    %cst = arith.constant dense<0.000000e+00> : vector<8x128xf32>
    %5 = tpu.matmul %3, %4, %cst {dimension_numbers = #tpu.dot_dimension_numbers<[1], [0], [0], [1], [0, 0, 1, 1], [], []>} : vector<8x2048xf32>, vector<2048x128xf32>, vector<8x128xf32> -> vector<8x128xf32>
    %cst_4 = arith.constant 6.250000e-02 : f32
    %6 = vector.broadcast %cst_4 : f32 to vector<8x128xf32>
    %7 = arith.mulf %5, %6 : vector<8x128xf32>
    %c0_5 = arith.constant 0 : index
    %c0_6 = arith.constant 0 : index
    %8 = vector.load %arg9[%c0_5, %c0_6] : memref<8x512xf32, #tpu.memory_space<vmem>>, vector<8x512xf32>
    %c0_7 = arith.constant 0 : index
    %c0_8 = arith.constant 0 : index
    %9 = vector.load %arg4[%c0_7, %c0_8] : memref<128x512xf32, #tpu.memory_space<vmem>>, vector<128x512xf32>
    %cst_9 = arith.constant dense<0.000000e+00> : vector<8x512xf32>
    %10 = tpu.matmul %7, %9, %cst_9 {dimension_numbers = #tpu.dot_dimension_numbers<[1], [0], [0], [1], [0, 0, 1, 1], [], []>} : vector<8x128xf32>, vector<128x512xf32>, vector<8x512xf32> -> vector<8x512xf32>
    %11 = arith.addf %8, %10 : vector<8x512xf32>
    %c0_10 = arith.constant 0 : index
    %c0_11 = arith.constant 0 : index
    %12 = vector.load %arg9[%c0_10, %c0_11] : memref<8x512xf32, #tpu.memory_space<vmem>>, vector<8x512xf32>
    tpu.vector_store %arg9[%c0_10, %c0_11], %11 {strides = array<i32>} : memref<8x512xf32, #tpu.memory_space<vmem>>, vector<8x512xf32>,
    %c15_i32 = arith.constant 15 : i32
    %13 = arith.cmpi eq, %arg1, %c15_i32 : i32
    %14 = arith.extui %13 : i1 to i32
    %c0_i32_12 = arith.constant 0 : i32
    %15 = arith.cmpi ne, %14, %c0_i32_12 : i32
    scf.if %15 {
      %c0_13 = arith.constant 0 : index
      %c0_14 = arith.constant 0 : index
      %16 = vector.load %arg9[%c0_13, %c0_14] : memref<8x512xf32, #tpu.memory_space<vmem>>, vector<8x512xf32>
      %c0_15 = arith.constant 0 : index
      %c0_16 = arith.constant 0 : index
      %17 = vector.load %arg5[%c0_15, %c0_16] : memref<1x512xf32, #tpu.memory_space<vmem>>, vector<1x512xf32>
      %18 = vector.broadcast %17 : vector<1x512xf32> to vector<8x512xf32>
      %19 = arith.addf %16, %18 : vector<8x512xf32>
      %cst_17 = arith.constant 0.000000e+00 : f32
      %20 = vector.broadcast %cst_17 : f32 to vector<8x512xf32>
      %21 = arith.maximumf %19, %20 : vector<8x512xf32>
      %c0_18 = arith.constant 0 : index
      %c0_19 = arith.constant 0 : index
      %22 = vector.load %arg6[%c0_18, %c0_19] : memref<512x128xf32, #tpu.memory_space<vmem>>, vector<512x128xf32>
      %cst_20 = arith.constant dense<0.000000e+00> : vector<8x128xf32>
      %23 = tpu.matmul %21, %22, %cst_20 {dimension_numbers = #tpu.dot_dimension_numbers<[1], [0], [0], [1], [0, 0, 1, 1], [], []>} : vector<8x512xf32>, vector<512x128xf32>, vector<8x128xf32> -> vector<8x128xf32>
      %c0_21 = arith.constant 0 : index
      %c0_22 = arith.constant 0 : index
      %24 = vector.load %arg7[%c0_21, %c0_22] : memref<1x128xf32, #tpu.memory_space<vmem>>, vector<1x128xf32>
      %25 = vector.broadcast %24 : vector<1x128xf32> to vector<8x128xf32>
      %26 = arith.addf %23, %25 : vector<8x128xf32>
      %c0_23 = arith.constant 0 : index
      %c0_24 = arith.constant 0 : index
      %27 = vector.load %arg8[%c0_23, %c0_24] : memref<8x128xf32, #tpu.memory_space<vmem>>, vector<8x128xf32>
      tpu.vector_store %arg8[%c0_23, %c0_24], %26 {strides = array<i32>} : memref<8x128xf32, #tpu.memory_space<vmem>>, vector<8x128xf32>,
    } else {
    }
    return
  }
  func.func @transform_0(%arg0: i32, %arg1: i32) -> (i32, i32) {
    %c0_i32 = arith.constant 0 : i32
    return %arg0, %arg1 : i32, i32
  }
  func.func @transform_1(%arg0: i32, %arg1: i32) -> (i32, i32) {
    %c0_i32 = arith.constant 0 : i32
    %c0_i32_0 = arith.constant 0 : i32
    %c0_i32_1 = arith.constant 0 : i32
    return %c0_i32, %c0_i32_0 : i32, i32
  }
  func.func @transform_2(%arg0: i32, %arg1: i32) -> (i32, i32) {
    %c0_i32 = arith.constant 0 : i32
    %c0_i32_0 = arith.constant 0 : i32
    return %arg1, %c0_i32 : i32, i32
  }
  func.func @transform_3(%arg0: i32, %arg1: i32) -> (i32, i32) {
    %c0_i32 = arith.constant 0 : i32
    %c0_i32_0 = arith.constant 0 : i32
    %c0_i32_1 = arith.constant 0 : i32
    return %c0_i32, %c0_i32_0 : i32, i32
  }
  func.func @transform_4(%arg0: i32, %arg1: i32) -> (i32, i32) {
    %c0_i32 = arith.constant 0 : i32
    %c0_i32_0 = arith.constant 0 : i32
    %c0_i32_1 = arith.constant 0 : i32
    return %c0_i32, %c0_i32_0 : i32, i32
  }
  func.func @transform_5(%arg0: i32, %arg1: i32) -> (i32, i32) {
    %c0_i32 = arith.constant 0 : i32
    %c0_i32_0 = arith.constant 0 : i32
    %c0_i32_1 = arith.constant 0 : i32
    return %c0_i32, %c0_i32_0 : i32, i32
  }
  func.func @transform_6(%arg0: i32, %arg1: i32) -> (i32, i32) {
    %c0_i32 = arith.constant 0 : i32
    %c0_i32_0 = arith.constant 0 : i32
    return %arg0, %c0_i32 : i32, i32
  }
}

</mosaic_0001>

<bundles_post_ra>
// kernel: tpu_custom_call.1
= control target key start
LH: loop header
LB: loop body
LE: loop exit
PB: predicated region body
PF: predicated region fallthrough
CT: control target
= control target key end

     0   :  { %s3396_s0 = inlined_call_operand.hbm [shape: f32[8,32768], index: 0, kind: input, shape index: {}]   ;;  %s3397_s1 = inlined_call_operand.hbm [shape: f32[2048,128], index: 1, kind: input, shape index: {}]   ;;  %s3398_s2 = inlined_call_operand.hbm [shape: f32[2048,512], index: 2, kind: input, shape index: {}]   ;;  %s3399_s3 = inlined_call_operand.hbm [shape: f32[1,512], index: 3, kind: input, shape index: {}]   ;;  %s3400_s4 = inlined_call_operand.hbm [shape: f32[512,128], index: 4, kind: input, shape index: {}]   ;;  %s3401_s5 = inlined_call_operand.hbm [shape: f32[1,128], index: 5, kind: input, shape index: {}]   ;;  %s3402_s6 = inlined_call_operand.hbm [shape: f32[8,128], index: 6, kind: output, shape index: {}]  }
   0x1   :  { %3412 = sst [smem:[#allocation22_spill]] %s3396_s0 }
   0x2   :  { %3413 = sst [smem:[#allocation23_spill]] %s3397_s1 }
   0x3   :  { %3414 = sst [smem:[#allocation24_spill]] %s3400_s4 }
   0x4   :  { %11 = vsyncpa [#allocation4], 0 }
   0x5   :  { %13 = vsyncpa [#allocation4 + $0x1], 0 }
   0x6   :  { %14 = vsyncpa [#allocation7], 0 }
   0x7   :  { %15 = vsyncpa [#allocation11], 0 }
   0x8   :  { %16 = vsyncpa [#allocation5], 0  ;;  %s3008_s21 = smov 0   ;;  %s3010_s22 = smov 0  }
   0x9   :  { %s3012_s23 = smov 0   ;;  %s3014_s24 = smov 0  }
   0xa   :  { %s3016_s25 = smov 0   ;;  %s3018_s26 = smov 0  }
   0xb LB: > { %s3039_s27 = sadd.s32 4294967295, %s2958_s26   ;;  %p1812_p0 = scmp.ge.s32.totalorder %s2958_s26, 1  ;;  %s2958_s26 = sphi %s3018_s26, %s22_s26   ;;  %s2954_s25 = sphi %s3016_s25, %s3445_s25   ;;  %s2950_s24 = sphi %s3014_s24, %s3444_s24   ;;  %s2946_s23 = sphi %s3012_s23, %s3443_s23   ;;  %s2942_s22 = sphi %s3010_s22, %s3442_s22   ;;  %s2938_s21 = sphi %s3008_s21, %s3441_s21  }
   0xc   : > { %p3403_p1 = scmp.eq.s32.totalorder %s3039_s27, 0  ;;  %p203_p2 = scmp.lt.s32.totalorder %s2958_s26, 17 }
   0xd   : > { %s2960_s29 = smov [#allocation6]   ;;  %s2961_s8 = smov [#allocation10]  }
   0xe   : > { %p3044_p3 = pnand %p1812_p0, %p203_p2  ;;  %s215_s30 = sshll.u32 %s2960_s29, 4  ;;  %s216_s30 = int_to_ptr.vmem [resolvable:$true] %s215_s30 }
   0xf   : > { %s239_s9 = sshll.u32 %s2961_s8, 4  ;;  %s3417_s1 = sld [smem:[#allocation23_spill]]  ;;  %s3056_s9 = int_to_ptr.vmem [resolvable:$true] %s239_s9 }
  0x10   : > { %s3415_s28 = scalar_select %p3044_p3, 1, 0 }
  0x11   : > { %p2600_p4 = pneg %p3044_p3 }
  0x13   : > { %p3052_p5 = pnand %p2600_p4, %p3403_p1 }
  0x15   : > { %s3416_s7 = scalar_select %p3052_p5, 1, 0 }
  0x16   : > { %s2690_s12 = scalar_lea.hbm %s3417_s1, 32768  ;;  %p3066_p7 = pneg %p3052_p5 }
  0x17   : > { %p2691_p6 = scmp.ne.s32.totalorder %s3417_s1, %s2690_s12  ;;  %p2697_p10 = scmp.lt.u32.totalorder %s2690_s12, %s3417_s1 }
  0x19   : > { %p2693_p8 = pnand %p3066_p7, %p2691_p6 }
  0x1b   : > { %p2694_p9 = pneg %p2693_p8 }
  0x1d   : > { %p2699_p11 = pnand %p2697_p10, %p2694_p9 }
  0x1f   : > { %2702 = shalt.err (!%p2699_p11)
}
  0x20   : > { %s2703_s18 = scalar_lea.vmem %s216_s30, 32768  ;;  %p2711_p2 = scmp.lt.s32.totalorder %s216_s30, %s216_s30 }
  0x21   : > { %p2704_p12 = scmp.ne.s32.totalorder %s216_s30, %s2703_s18  ;;  %p2712_p4 = scmp.lt.s32.totalorder %s2703_s18, %s2703_s18 }
  0x23   : > { %p2706_p13 = pnand %p2704_p12, %p3066_p7  ;;  %p2713_p1 = por %p2712_p4, %p2711_p2 }
  0x25   : > { %p2707_p0 = pneg %p2706_p13 }
  0x27   : > { %p2714_p3 = pnand %p2713_p1, %p2707_p0 }
  0x29   : > { %2717 = shalt.err (!%p2714_p3)
}
  0x2a   : > { %s2962_s19 = smov 128   ;;  %s2963_s20 = smov 8  }
  0x2b   : > { %2603 = dma.hbm_to_vmem [thread:$0]  (!%p3052_p5), %s3417_s1, 32768, %s216_s30, [#allocation7], %s2962_s19, %s2962_s19, %s2963_s20  }
  0x2c   : > { %s3419_s4 = sld [smem:[#allocation24_spill]] }
  0x32   : > { %s2718_s12 = scalar_lea.hbm %s3419_s4, 8192 }
  0x33   : > { %p2719_p6 = scmp.ne.s32.totalorder %s3419_s4, %s2718_s12  ;;  %p2725_p8 = scmp.lt.u32.totalorder %s2718_s12, %s3419_s4 }
  0x35   : > { %p2721_p1 = pnand %p2719_p6, %p3066_p7 }
  0x37   : > { %p2722_p3 = pneg %p2721_p1 }
  0x39   : > { %p2727_p9 = pnand %p2725_p8, %p2722_p3 }
  0x3b   : > { %2730 = shalt.err (!%p2727_p9)
}
  0x3c   : > { %s2731_s30 = scalar_lea.vmem %s3056_s9, 8192  ;;  %p2739_p13 = scmp.lt.s32.totalorder %s3056_s9, %s3056_s9 }
  0x3d   : > { %p2732_p10 = scmp.ne.s32.totalorder %s3056_s9, %s2731_s30  ;;  %p2740_p0 = scmp.lt.s32.totalorder %s2731_s30, %s2731_s30 }
  0x3f   : > { %p2734_p11 = pnand %p2732_p10, %p3066_p7  ;;  %p2741_p2 = por %p2740_p0, %p2739_p13 }
  0x41   : > { %p2735_p12 = pneg %p2734_p11 }
  0x43   : > { %p2742_p4 = pnand %p2741_p2, %p2735_p12 }
  0x45   : > { %2745 = shalt.err (!%p2742_p4)
}
  0x46   : > { %2609 = dma.hbm_to_vmem [thread:$0]  (!%p3052_p5), %s3419_s4, 8192, %s3056_s9, [#allocation11], %s2962_s19, %s2962_s19, %s2963_s20  }
  0x47   : > { %s31_s8 = sadd.s32 1, %s2954_s25  ;;  %s43_s10 = sadd.s32 1, %s2946_s23 }
  0x48   : > { %p32_p6 = scmp.ge.s32.totalorder %s31_s8, 16  ;;  %p50_p1 = scmp.ne.s32.totalorder %s2946_s23, %s2942_s22 }
  0x49   : > { %p51_p3 = scmp.eq.s32.totalorder %s2958_s26, 0  ;;  %p56_p8 = scmp.ne.s32.totalorder %s2942_s22, %s2938_s21 }
  0x4a   : > { %s3447_s8 = smov (%p32_p6, %s31_s8), 0  ;;  %p3422_p10 = scmp.eq.s32.totalorder %s3039_s27, 0 }
  0x4b   : > { %3420 = sst [smem:[#allocation20_spill]] %s3447_s8  ;;  %p3114_p9 = por %p51_p3, %p50_p1 }
  0x4c   : > { %p3120_p11 = por %p3422_p10, %p56_p8  ;;  %s39_s9 = ssub.s32 %s2954_s25, %s3447_s8 }
  0x4d   : > { %p2624_p12 = scmp.lt.s32.totalorder %s2958_s26, 16  ;;  %p41_p13 = scmp.eq.s32.totalorder %s39_s9, 0 }
  0x4e   : > { %s3423_s12 = scalar_select %p3120_p11, 1, 0 }
  0x4f   : > { %s264_s19 = sand.u32 1, %s2958_s26   ;;  %s266_s20 = sand.u32 1, %s2946_s23  }
  0x50   : > { %s3130_s13 = scalar_select %p41_p13, %s2946_s23, %s43_s10  }
  0x51   : > { %s1818_s21 = sshll.u32 %s266_s20, 7  ;;  %s1839_s14 = sshll.u32 %s2954_s25, 11 }
  0x52   : > { %3424 = sst [smem:[#allocation21_spill]] %s3130_s13  ;;  %s3425_s0 = sld [smem:[#allocation22_spill]] }
  0x53   : > { %s268_s18 = scalar_lea.vmem [#allocation3], %s1818_s21  ;;  %p3140_p0 = pnand %p2624_p12, %p3114_p9 }
  0x54   : > { %s278_s29 = sshll.u32 %s268_s18, 4  ;;  %s3146_s10 = sshll.u32 %s266_s20, 9  ;;  %s3144_s29 = int_to_ptr.vmem [resolvable:$true] %s278_s29 }
  0x55   : > { %s3426_s9 = scalar_select %p3140_p0, 1, 0 }
  0x56   : > { %s3148_s16 = scalar_lea.sflag [#allocation4], %s264_s19  ;;  %p3409_p4 = pneg %p3140_p0 }
  0x58   : > { %s3136_s30 = scalar_lea.hbm %s3425_s0, %s1839_s14  ;;  %s2751_s17 = scalar_lea.hbm %s3425_s0, 32768 }
  0x59   : > { %s2746_s14 = scalar_lea.hbm %s3136_s30, 2048  ;;  %p2752_p3 = scmp.lt.u32.totalorder %s3136_s30, %s3425_s0 }
  0x5a   : > { %p2747_p2 = scmp.ne.s32.totalorder %s3136_s30, %s2746_s14  ;;  %p2753_p8 = scmp.lt.u32.totalorder %s2751_s17, %s2746_s14 }
  0x5b   : > { %p2755_p10 = scmp.lt.u32.totalorder %s2746_s14, %s3136_s30 }
  0x5c   : > { %p2749_p6 = pnand %p3409_p4, %p2747_p2  ;;  %p2754_p9 = por %p2753_p8, %p2752_p3 }
  0x5e   : > { %p2750_p1 = pneg %p2749_p6  ;;  %p2756_p12 = por %p2755_p10, %p2754_p9 }
  0x60   : > { %p2757_p13 = pnand %p2756_p12, %p2750_p1 }
  0x62   : > { %2760 = shalt.err (!%p2757_p13)
}
  0x63   : > { %s2761_s19 = scalar_lea.vmem %s3144_s29, 2048  ;;  %s2964_s20 = smov [#allocation3]  }
  0x64   : > { %p2762_p2 = scmp.ne.s32.totalorder %s3144_s29, %s2761_s19  ;;  %s2766_s11 = sshll.u32 %s2964_s20, 4  ;;  %s2767_s11 = int_to_ptr.vmem [resolvable:$false] %s2766_s11 }
  0x65   : > { %s2768_s1 = scalar_lea.vmem %s2767_s11, 4096  ;;  %p2769_p5 = scmp.lt.s32.totalorder %s3144_s29, %s2767_s11 }
  0x66   : > { %p2764_p6 = pnand %p2762_p2, %p3409_p4  ;;  %p2770_p3 = scmp.lt.s32.totalorder %s2768_s1, %s2761_s19 }
  0x68   : > { %p2765_p11 = pneg %p2764_p6  ;;  %p2771_p8 = por %p2770_p3, %p2769_p5 }
  0x6a   : > { %p2772_p9 = pnand %p2771_p8, %p2765_p11 }
  0x6c   : > { %2775 = shalt.err (!%p2772_p9)
}
  0x6d   : > { %2616 = dma.hbm_to_vmem [thread:$0]  (!%p3140_p0), %s3136_s30, 2048, %s3144_s29, %s3148_s16  }
  0x6e   : > { %s1841_s14 = sshll.u32 %s2954_s25, 13  ;;  %s289_s21 = scalar_lea.vmem [#allocation8], %s3146_s10 }
  0x6f   : > { %s297_s17 = sshll.u32 %s289_s21, 4  ;;  %s2965_s18 = smov [#allocation9]   ;;  %s3178_s17 = int_to_ptr.vmem [resolvable:$true] %s297_s17 }
  0x70   : > { %s229_s20 = sshll.u32 %s2965_s18, 4  ;;  %s2966_s19 = smov [#allocation12]   ;;  %s230_s20 = int_to_ptr.vmem [resolvable:$true] %s229_s20 }
  0x71   : > { %s253_s11 = sshll.u32 %s2966_s19, 4  ;;  %s2776_s4 = scalar_lea.hbm %s3399_s3, 64  ;;  %s254_s11 = int_to_ptr.vmem [resolvable:$true] %s253_s11 }
  0x72   : > { %p2777_p5 = scmp.ne.s32.totalorder %s3399_s3, %s2776_s4  ;;  %p2783_p10 = scmp.lt.u32.totalorder %s2776_s4, %s3399_s3 }
  0x74   : > { %p2779_p11 = pnand %p2777_p5, %p3066_p7 }
  0x76   : > { %p2780_p1 = pneg %p2779_p11 }
  0x78   : > { %p2785_p12 = pnand %p2783_p10, %p2780_p1 }
  0x7a   : > { %2788 = shalt.err (!%p2785_p12)
}
  0x7b   : > { %s2789_s10 = scalar_lea.vmem %s230_s20, 64  ;;  %p2797_p3 = scmp.lt.s32.totalorder %s230_s20, %s230_s20 }
  0x7c   : > { %p2790_p13 = scmp.ne.s32.totalorder %s230_s20, %s2789_s10  ;;  %p2798_p8 = scmp.lt.s32.totalorder %s2789_s10, %s2789_s10 }
  0x7e   : > { %p2792_p2 = pnand %p2790_p13, %p3066_p7  ;;  %p2799_p9 = por %p2798_p8, %p2797_p3 }
  0x80   : > { %p2793_p6 = pneg %p2792_p2 }
  0x82   : > { %p2800_p4 = pnand %p2799_p9, %p2793_p6 }
  0x84   : > { %2803 = shalt.err (!%p2800_p4)
}
  0x85   : > { %p3427_p5 = scmp.ne.s32.totalorder %s3416_s7, 0  ;;  %s3201_s21 = scalar_lea.hbm %s3398_s2, %s1841_s14 }
  0x86   : > { %s2804_s1 = scalar_lea.hbm %s3401_s5, 16 }
  0x87   : > { %2606 = dma.hbm_to_vmem [thread:$0]  (!%p3427_p5), %s3399_s3, 64, %s230_s20, [#allocation7]  }
  0x88   : > { %p2805_p4 = scmp.ne.s32.totalorder %s3401_s5, %s2804_s1  ;;  %p2811_p10 = scmp.lt.u32.totalorder %s2804_s1, %s3401_s5 }
  0x8a   : > { %p2807_p11 = pnand %p2805_p4, %p3066_p7 }
  0x8c   : > { %p2808_p1 = pneg %p2807_p11 }
  0x8e   : > { %p2813_p12 = pnand %p2811_p10, %p2808_p1 }
  0x90   : > { %2816 = shalt.err (!%p2813_p12)
}
  0x91   : > { %s2817_s20 = scalar_lea.vmem %s254_s11, 16  ;;  %s2824_s14 = scalar_lea.vmem %s254_s11, 32 }
  0x92   : > { %p2818_p13 = scmp.ne.s32.totalorder %s254_s11, %s2817_s20  ;;  %p2825_p3 = scmp.lt.s32.totalorder %s254_s11, %s254_s11 }
  0x93   : > { %p2826_p8 = scmp.lt.s32.totalorder %s2824_s14, %s2817_s20 }
  0x94   : > { %p2820_p2 = pnand %p2818_p13, %p3066_p7 }
  0x95   : > { %p2827_p9 = por %p2826_p8, %p2825_p3 }
  0x96   : > { %p2821_p6 = pneg %p2820_p2 }
  0x98   : > { %p2828_p0 = pnand %p2827_p9, %p2821_p6 }
  0x9a   : > { %2831 = shalt.err (!%p2828_p0)
}
  0x9b   : > { %2612 = dma.hbm_to_vmem [thread:$0]  (!%p3427_p5), %s3401_s5, 16, %s254_s11, [#allocation11]  }
  0x9c   : > { %s2832_s15 = scalar_lea.hbm %s3201_s21, 8192  ;;  %p3428_p4 = scmp.ne.s32.totalorder %s3426_s9, 0 }
  0x9d   : > { %p2833_p7 = scmp.ne.s32.totalorder %s3201_s21, %s2832_s15  ;;  %s2837_s19 = scalar_lea.hbm %s3398_s2, 131072 }
  0x9e   : > { %p3429_p11 = pneg %p3428_p4  ;;  %p2838_p0 = scmp.lt.u32.totalorder %s3201_s21, %s3398_s2 }
  0x9f   : > { %p2839_p12 = scmp.lt.u32.totalorder %s2837_s19, %s2832_s15  ;;  %p2841_p2 = scmp.lt.u32.totalorder %s2832_s15, %s3201_s21 }
  0xa0   : > { %p2835_p1 = pnand %p2833_p7, %p3429_p11 }
  0xa1   : > { %p2840_p13 = por %p2839_p12, %p2838_p0 }
  0xa2   : > { %p2836_p10 = pneg %p2835_p1 }
  0xa3   : > { %p2842_p6 = por %p2841_p2, %p2840_p13 }
  0xa5   : > { %p2843_p3 = pnand %p2842_p6, %p2836_p10 }
  0xa7   : > { %2846 = shalt.err (!%p2843_p3)
}
  0xa8   : > { %s2847_s11 = scalar_lea.vmem %s3178_s17, 8192  ;;  %p3430_p8 = pmov %p3429_p11 }
  0xa9   : > { %p2848_p5 = scmp.ne.s32.totalorder %s3178_s17, %s2847_s11  ;;  %s2967_s30 = smov [#allocation8]  }
  0xaa   : > { %s2852_s29 = sshll.u32 %s2967_s30, 4  ;;  %s2853_s29 = int_to_ptr.vmem [resolvable:$false] %s2852_s29 }
  0xab   : > { %p2850_p9 = pnand %p2848_p5, %p3430_p8  ;;  %s2854_s10 = scalar_lea.vmem %s2853_s29, 16384 }
  0xac   : > { %p2855_p11 = scmp.lt.s32.totalorder %s3178_s17, %s2853_s29  ;;  %p2856_p1 = scmp.lt.s32.totalorder %s2854_s10, %s2847_s11 }
  0xad   : > { %p2851_p7 = pneg %p2850_p9 }
  0xae   : > { %p2857_p0 = por %p2856_p1, %p2855_p11 }
  0xb0   : > { %p2858_p12 = pnand %p2857_p0, %p2851_p7 }
  0xb2   : > { %2861 = shalt.err (!%p2858_p12)
}
  0xb3   : > { %s2968_s0 = smov 512   ;;  %s2969_s20 = smov 32  }
  0xb4   : > { %2619 = dma.hbm_to_vmem [thread:$0]  (!%p3428_p4), %s3201_s21, 8192, %s3178_s17, %s3148_s16, %s2968_s0, %s2968_s0, %s2969_s20  }
  0xb5   : > { %p3431_p10 = scmp.ne.s32.totalorder %s3415_s28, 0 }
  0xb6   : > { %s311_s14 = sand.u32 (!%p3431_p10), 1, %s3039_s27   ;;  %s313_s8 = sand.u32 (!%p3431_p10), 1, %s2942_s22  }
  0xb7   : > { %309 = sbr.rel (%p3431_p10) target bundleno = 1041 (0x411), region = 44  ;;  %s1826_s4 = sshll.u32 (!%p3431_p10), %s313_s8, 7 }
  0xb8   : > { %s312_s15 = scalar_lea.sflag (!%p3431_p10), [#allocation4], %s311_s14  ;;  %s3249_s13 = scalar_lea.vmem (!%p3431_p10), [#allocation3], %s1826_s4 }
  0xb9   : > { %p3432_p13 = scmp.ne.s32.totalorder (!%p3431_p10), %s3423_s12, 0 }
  0xbe   : > { %2913 = dma.done.wait (%p3432_p13), %s312_s15, 2048  }
  0xbf   : > { %2915 = vsyncadd (%p3432_p13), %s312_s15, 4294965248  ;;  %p3433_p2 = scmp.eq.s32.totalorder %s3039_s27, 0 }
  0xc1   : > { %2917 = dma.done.wait (%p3433_p2), [#allocation7], 32768   ;;  %p3434_p4 = pmov %p3433_p2 }
  0xc2   : > { %s1828_s28 = sshll.u32 %s313_s8, 9 }
  0xc3   : > { %2919 = vsyncadd (%p3434_p4), [#allocation7], 4294934528  ;;  %s3259_s9 = scalar_lea.vmem [#allocation8], %s1828_s28 }
  0xc4   : > { %2921 = dma.done.wait (%p3432_p13), %s312_s15, 8192  }
  0xc5   : > { %2923 = vsyncadd (%p3432_p13), %s312_s15, 4294959104  ;;  %p3435_p6 = pmov %p3433_p2 }
  0xc6   : > { %p3436_p3 = pmov %p3433_p2 }
  0xc7   : > { %2925 = dma.done.wait (%p3435_p6), [#allocation7], 64  }
  0xc8   : > { %2927 = vsyncadd (%p3436_p3), [#allocation7], 4294967232  ;;  %p3437_p5 = pmov %p3433_p2 }
  0xc9   : > { %p3438_p8 = pmov %p3433_p2 }
  0xca   : > { %2929 = dma.done.wait (%p3437_p5), [#allocation11], 8208  }
  0xcb   : > { %2931 = vsyncadd (%p3438_p8), [#allocation11], 4294959088  ;;  %p1832_p9 = scmp.ne.s32.totalorder %s2950_s24, 0 }
  0xcc   : > { %v2970_v0 = vmov (!%p1832_p9), 0.0  }
  0xcd   : > { %374 = sbr.rel (%p1832_p9) target bundleno = 212 (0xd4), region = 72  ;;  %375 = vst [vmem:[#allocation2] sm:$0xff] (!%p1832_p9), %v2970_v0  ;;  %376 = vst [vmem:[#allocation2 + $0x8] sm:$0xff] (!%p1832_p9), %v2970_v0 }
  0xce   : > { %377 = vst [vmem:[#allocation2 + $0x10] sm:$0xff] (!%p1832_p9), %v2970_v0  ;;  %378 = vst [vmem:[#allocation2 + $0x18] sm:$0xff] (!%p1832_p9), %v2970_v0 }
  0xd4 PF: > { %v411_v1 = vld [vmem:[#allocation6 + $0x80] sm:$0xff]  ;;  %v412_v2 = vld [vmem:[#allocation6 + $0x88] sm:$0xff]  ;;  %v413_v12 = vld [vmem:[#allocation6 + $0x90] sm:$0xff]  ;;  %p1833_p7 = scmp.ne.s32.totalorder %s2950_s24, 15 }
  0xd5   : > { %v443_v3 = vld [vmem:[#allocation6 + $0x180] sm:$0xff]  ;;  %v2192_v4 = vpack.c.bf16 %v412_v2, %v411_v1  ;;  %v444_v5 = vld [vmem:[#allocation6 + $0x188] sm:$0xff]  ;;  %v414_v14 = vld [vmem:[#allocation6 + $0x98] sm:$0xff] }
  0xd6   : > { %v395_v6 = vld [vmem:[#allocation6] sm:$0xff]  ;;  %v396_v7 = vld [vmem:[#allocation6 + $0x8] sm:$0xff]  ;;  %v2224_v8 = vpack.c.bf16 %v444_v5, %v443_v3  ;;  %v445_v15 = vld [vmem:[#allocation6 + $0x190] sm:$0xff]  ;;  %v2196_v17 = vpack.c.bf16 %v414_v14, %v413_v12 }
  0xd7   : > { %v2194_v9 = vpack.c.bf16 %v396_v7, %v395_v6  ;;  %v427_v10 = vld [vmem:[#allocation6 + $0x100] sm:$0xff]  ;;  %v428_v11 = vld [vmem:[#allocation6 + $0x108] sm:$0xff]  ;;  %2193 = vmatprep.subr.bf16.mxu0 %v2192_v4  ;;  %v446_v16 = vld [vmem:[#allocation6 + $0x198] sm:$0xff] }
  0xd8   : > { %v2226_v13 = vpack.c.bf16 %v428_v11, %v427_v10  ;;  %2225 = vmatprep.subr.bf16.mxu1 %v2224_v8  ;;  %v2228_v18 = vpack.c.bf16 %v446_v16, %v445_v15  ;;  %v397_v19 = vld [vmem:[#allocation6 + $0x10] sm:$0xff]  ;;  %v398_v20 = vld [vmem:[#allocation6 + $0x18] sm:$0xff]  ;;  %v415_v24 = vld [vmem:[#allocation6 + $0xa0] sm:$0xff] }
  0xd9   : > { %2195 = vmatpush3.bf16.msra.mxu0 %v2194_v9  ;;  %v429_v21 = vld [vmem:[#allocation6 + $0x110] sm:$0xff]  ;;  %v2198_v22 = vpack.c.bf16 %v398_v20, %v397_v19  ;;  %v430_v23 = vld [vmem:[#allocation6 + $0x118] sm:$0xff]  ;;  %v416_v25 = vld [vmem:[#allocation6 + $0xa8] sm:$0xff] }
  0xda   : > { %2227 = vmatpush3.bf16.msra.mxu1 %v2226_v13  ;;  %2197 = vmatprep.subr.bf16.mxu0 %v2196_v17  ;;  %v2230_v26 = vpack.c.bf16 %v430_v23, %v429_v21  ;;  %v2200_v27 = vpack.c.bf16 %v416_v25, %v415_v24  ;;  %v447_v28 = vld [vmem:[#allocation6 + $0x1a0] sm:$0xff]  ;;  %v448_v29 = vld [vmem:[#allocation6 + $0x1a8] sm:$0xff]  ;;  %v417_v36 = vld [vmem:[#allocation6 + $0xb0] sm:$0xff] }
  0xdb   : > { %2229 = vmatprep.subr.bf16.mxu1 %v2228_v18  ;;  %v399_v30 = vld [vmem:[#allocation6 + $0x20] sm:$0xff]  ;;  %v2232_v31 = vpack.c.bf16 %v448_v29, %v447_v28  ;;  %v400_v32 = vld [vmem:[#allocation6 + $0x28] sm:$0xff]  ;;  %v418_v37 = vld [vmem:[#allocation6 + $0xb8] sm:$0xff] }
  0xdc   : > { %v431_v33 = vld [vmem:[#allocation6 + $0x120] sm:$0xff]  ;;  %v432_v34 = vld [vmem:[#allocation6 + $0x128] sm:$0xff]  ;;  %v2202_v35 = vpack.c.bf16 %v400_v32, %v399_v30  ;;  %v449_v38 = vld [vmem:[#allocation6 + $0x1b0] sm:$0xff]  ;;  %v2204_v40 = vpack.c.bf16 %v418_v37, %v417_v36 }
  0xdd   : > { %2199 = vmatpush3.bf16.msra.mxu0 %v2198_v22  ;;  %v2234_v39 = vpack.c.bf16 %v432_v34, %v431_v33  ;;  %v450_v41 = vld [vmem:[#allocation6 + $0x1b8] sm:$0xff]  ;;  %v401_v42 = vld [vmem:[#allocation6 + $0x30] sm:$0xff]  ;;  %v419_v47 = vld [vmem:[#allocation6 + $0xc0] sm:$0xff] }
  0xde   : > { %2231 = vmatpush3.bf16.msra.mxu1 %v2230_v26  ;;  %2201 = vmatprep.subr.bf16.mxu0 %v2200_v27  ;;  %v402_v43 = vld [vmem:[#allocation6 + $0x38] sm:$0xff]  ;;  %v2236_v44 = vpack.c.bf16 %v450_v41, %v449_v38  ;;  %v433_v45 = vld [vmem:[#allocation6 + $0x130] sm:$0xff]  ;;  %v420_v48 = vld [vmem:[#allocation6 + $0xc8] sm:$0xff] }
  0xdf   : > { %2233 = vmatprep.subr.bf16.mxu1 %v2232_v31  ;;  %v434_v46 = vld [vmem:[#allocation6 + $0x138] sm:$0xff]  ;;  %v451_v49 = vld [vmem:[#allocation6 + $0x1c0] sm:$0xff]  ;;  %v452_v50 = vld [vmem:[#allocation6 + $0x1c8] sm:$0xff]  ;;  %v2206_v51 = vpack.c.bf16 %v402_v43, %v401_v42  ;;  %v2208_v53 = vpack.c.bf16 %v420_v48, %v419_v47 }
  0xe0   : > { %v2238_v52 = vpack.c.bf16 %v434_v46, %v433_v45  ;;  %v403_v54 = vld [vmem:[#allocation6 + $0x40] sm:$0xff]  ;;  %v404_v55 = vld [vmem:[#allocation6 + $0x48] sm:$0xff]  ;;  %v2240_v57 = vpack.c.bf16 %v452_v50, %v451_v49  ;;  %v421_v59 = vld [vmem:[#allocation6 + $0xd0] sm:$0xff] }
  0xe1   : > { %2203 = vmatpush3.bf16.msra.mxu0 %v2202_v35  ;;  %v435_v56 = vld [vmem:[#allocation6 + $0x140] sm:$0xff]  ;;  %v436_v58 = vld [vmem:[#allocation6 + $0x148] sm:$0xff]  ;;  %v422_v60 = vld [vmem:[#allocation6 + $0xd8] sm:$0xff]  ;;  %v2210_v63 = vpack.c.bf16 %v404_v55, %v403_v54 }
  0xe2   : > { %2235 = vmatpush3.bf16.msra.mxu1 %v2234_v39  ;;  %2205 = vmatprep.subr.bf16.mxu0 %v2204_v40  ;;  %v453_v61 = vld [vmem:[#allocation6 + $0x1d0] sm:$0xff]  ;;  %v454_v62 = vld [vmem:[#allocation6 + $0x1d8] sm:$0xff]  ;;  %v2242_v0 = vpack.c.bf16 %v436_v58, %v435_v56  ;;  %v2212_v1 = vpack.c.bf16 %v422_v60, %v421_v59  ;;  %v423_v7 = vld [vmem:[#allocation6 + $0xe0] sm:$0xff] }
  0xe3   : > { %2237 = vmatprep.subr.bf16.mxu1 %v2236_v44  ;;  %v405_v2 = vld [vmem:[#allocation6 + $0x50] sm:$0xff]  ;;  %v406_v3 = vld [vmem:[#allocation6 + $0x58] sm:$0xff]  ;;  %v2244_v5 = vpack.c.bf16 %v454_v62, %v453_v61  ;;  %v424_v8 = vld [vmem:[#allocation6 + $0xe8] sm:$0xff] }
  0xe4   : > { %v437_v4 = vld [vmem:[#allocation6 + $0x150] sm:$0xff]  ;;  %v438_v6 = vld [vmem:[#allocation6 + $0x158] sm:$0xff]  ;;  %v455_v9 = vld [vmem:[#allocation6 + $0x1e0] sm:$0xff]  ;;  %v2214_v11 = vpack.c.bf16 %v406_v3, %v405_v2  ;;  %v2216_v15 = vpack.c.bf16 %v424_v8, %v423_v7 }
  0xe5   : > { %2207 = vmatpush3.bf16.msra.mxu0 %v2206_v51  ;;  %v456_v10 = vld [vmem:[#allocation6 + $0x1e8] sm:$0xff]  ;;  %v407_v12 = vld [vmem:[#allocation6 + $0x60] sm:$0xff]  ;;  %v2246_v14 = vpack.c.bf16 %v438_v6, %v437_v4  ;;  %v382_v18 = vld [vmem:[%s3249_s13 + $0x18] sm:$0xff] }
  0xe6   : > { %2239 = vmatpush3.bf16.msra.mxu1 %v2238_v52  ;;  %2209 = vmatprep.subr.bf16.mxu0 %v2208_v53  ;;  %v408_v13 = vld [vmem:[#allocation6 + $0x68] sm:$0xff]  ;;  %v439_v16 = vld [vmem:[#allocation6 + $0x160] sm:$0xff]  ;;  %v2248_v19 = vpack.c.bf16 %v456_v10, %v455_v9  ;;  %v425_v21 = vld [vmem:[#allocation6 + $0xf0] sm:$0xff] }
  0xe7   : > { %2241 = vmatprep.subr.bf16.mxu1 %v2240_v57  ;;  %v380_v17 = vld [vmem:[%s3249_s13 + $0x8] sm:$0xff]  ;;  %v426_v22 = vld [vmem:[#allocation6 + $0xf8] sm:$0xff]  ;;  %v457_v23 = vld [vmem:[#allocation6 + $0x1f0] sm:$0xff]  ;;  %785 = vmatprep.mubr.f32.mxu1 %v382_v18  ;;  %v2218_v25 = vpack.c.bf16 %v408_v13, %v407_v12 }
  0xe8   : > { %v440_v20 = vld [vmem:[#allocation6 + $0x168] sm:$0xff]  ;;  %715 = vmatprep.mubr.f32.mxu0 %v380_v17  ;;  %v458_v24 = vld [vmem:[#allocation6 + $0x1f8] sm:$0xff]  ;;  %v2220_v27 = vpack.c.bf16 %v426_v22, %v425_v21  ;;  %v409_v28 = vld [vmem:[#allocation6 + $0x70] sm:$0xff] }
  0xe9   : > { %2211 = vmatpush3.bf16.msra.mxu0 %v2210_v63  ;;  %v2250_v26 = vpack.c.bf16 %v440_v20, %v439_v16  ;;  %v410_v29 = vld [vmem:[#allocation6 + $0x78] sm:$0xff]  ;;  %v441_v30 = vld [vmem:[#allocation6 + $0x170] sm:$0xff]  ;;  %v2252_v31 = vpack.c.bf16 %v458_v24, %v457_v23  ;;  %v475_v33 = vld [vmem:[#allocation6 + $0x280] sm:$0xff] }
  0xea   : > { %2243 = vmatpush3.bf16.msra.mxu1 %v2242_v0  ;;  %2213 = vmatprep.subr.bf16.mxu0 %v2212_v1  ;;  %v442_v32 = vld [vmem:[#allocation6 + $0x178] sm:$0xff]  ;;  %v476_v34 = vld [vmem:[#allocation6 + $0x288] sm:$0xff]  ;;  %v507_v35 = vld [vmem:[#allocation6 + $0x380] sm:$0xff]  ;;  %v2222_v37 = vpack.c.bf16 %v410_v29, %v409_v28 }
  0xeb   : > { %2245 = vmatprep.subr.bf16.mxu1 %v2244_v5  ;;  %v508_v36 = vld [vmem:[#allocation6 + $0x388] sm:$0xff]  ;;  %v2254_v38 = vpack.c.bf16 %v442_v32, %v441_v30  ;;  %v2256_v39 = vpack.c.bf16 %v476_v34, %v475_v33  ;;  %v459_v40 = vld [vmem:[#allocation6 + $0x200] sm:$0xff]  ;;  %v477_v45 = vld [vmem:[#allocation6 + $0x290] sm:$0xff] }
  0xec   : > { %v460_v41 = vld [vmem:[#allocation6 + $0x208] sm:$0xff]  ;;  %v491_v42 = vld [vmem:[#allocation6 + $0x300] sm:$0xff]  ;;  %v2288_v43 = vpack.c.bf16 %v508_v36, %v507_v35  ;;  %v478_v46 = vld [vmem:[#allocation6 + $0x298] sm:$0xff] }
  0xed   : > { %2215 = vmatpush3.bf16.msra.mxu0 %v2214_v11  ;;  %v492_v44 = vld [vmem:[#allocation6 + $0x308] sm:$0xff]  ;;  %v509_v47 = vld [vmem:[#allocation6 + $0x390] sm:$0xff]  ;;  %v510_v48 = vld [vmem:[#allocation6 + $0x398] sm:$0xff]  ;;  %v2258_v51 = vpack.c.bf16 %v460_v41, %v459_v40  ;;  %v2260_v53 = vpack.c.bf16 %v478_v46, %v477_v45 }
  0xee   : > { %2247 = vmatpush3.bf16.msra.mxu1 %v2246_v14  ;;  %2217 = vmatprep.subr.bf16.mxu0 %v2216_v15  ;;  %v379_v49 = vld [vmem:[%s3249_s13] sm:$0xff]  ;;  %v381_v50 = vld [vmem:[%s3249_s13 + $0x10] sm:$0xff]  ;;  %v2290_v52 = vpack.c.bf16 %v492_v44, %v491_v42  ;;  %v462_v55 = vld [vmem:[#allocation6 + $0x218] sm:$0xff]  ;;  %v2292_v57 = vpack.c.bf16 %v510_v48, %v509_v47 }
  0xef   : > { %2249 = vmatprep.subr.bf16.mxu1 %v2248_v19  ;;  %v461_v54 = vld [vmem:[#allocation6 + $0x210] sm:$0xff]  ;;  %v494_v58 = vld [vmem:[#allocation6 + $0x318] sm:$0xff]  ;;  %v479_v59 = vld [vmem:[#allocation6 + $0x2a0] sm:$0xff] }
  0xf0   : > { %v493_v56 = vld [vmem:[#allocation6 + $0x310] sm:$0xff]  ;;  %v480_v60 = vld [vmem:[#allocation6 + $0x2a8] sm:$0xff]  ;;  %v511_v61 = vld [vmem:[#allocation6 + $0x3a0] sm:$0xff]  ;;  %v2262_v63 = vpack.c.bf16 %v462_v55, %v461_v54 }
  0xf1   : > { %2219 = vmatpush3.bf16.msra.mxu0 %v2218_v25  ;;  %v512_v62 = vld [vmem:[#allocation6 + $0x3a8] sm:$0xff]  ;;  %v2294_v0 = vpack.c.bf16 %v494_v58, %v493_v56  ;;  %v2264_v1 = vpack.c.bf16 %v480_v60, %v479_v59  ;;  %v463_v2 = vld [vmem:[#allocation6 + $0x220] sm:$0xff]  ;;  %v481_v7 = vld [vmem:[#allocation6 + $0x2b0] sm:$0xff] }
  0xf2   : > { %2251 = vmatpush3.bf16.msra.mxu1 %v2250_v26  ;;  %2221 = vmatprep.subr.bf16.mxu0 %v2220_v27  ;;  %v464_v3 = vld [vmem:[#allocation6 + $0x228] sm:$0xff]  ;;  %v495_v4 = vld [vmem:[#allocation6 + $0x320] sm:$0xff]  ;;  %v2296_v5 = vpack.c.bf16 %v512_v62, %v511_v61  ;;  %v482_v8 = vld [vmem:[#allocation6 + $0x2b8] sm:$0xff] }
  0xf3   : > { %2253 = vmatprep.subr.bf16.mxu1 %v2252_v31  ;;  %v496_v6 = vld [vmem:[#allocation6 + $0x328] sm:$0xff]  ;;  %v513_v9 = vld [vmem:[#allocation6 + $0x3b0] sm:$0xff]  ;;  %v514_v10 = vld [vmem:[#allocation6 + $0x3b8] sm:$0xff]  ;;  %v2266_v11 = vpack.c.bf16 %v464_v3, %v463_v2  ;;  %v2268_v13 = vpack.c.bf16 %v482_v8, %v481_v7 }
  0xf4   : > { %v2298_v12 = vpack.c.bf16 %v496_v6, %v495_v4  ;;  %v465_v14 = vld [vmem:[#allocation6 + $0x230] sm:$0xff]  ;;  %v466_v15 = vld [vmem:[#allocation6 + $0x238] sm:$0xff]  ;;  %v2300_v17 = vpack.c.bf16 %v514_v10, %v513_v9  ;;  %v483_v19 = vld [vmem:[#allocation6 + $0x2c0] sm:$0xff] }
  0xf5   : > { %2223 = vmatpush3.bf16.msra.mxu0 %v2222_v37  ;;  %v497_v16 = vld [vmem:[#allocation6 + $0x330] sm:$0xff]  ;;  %v498_v18 = vld [vmem:[#allocation6 + $0x338] sm:$0xff]  ;;  %v484_v20 = vld [vmem:[#allocation6 + $0x2c8] sm:$0xff]  ;;  %v2270_v23 = vpack.c.bf16 %v466_v15, %v465_v14 }
  0xf6   : > { %2255 = vmatpush3.bf16.msra.mxu1 %v2254_v38  ;;  %2257 = vmatprep.subr.bf16.mxu0 %v2256_v39  ;;  %v515_v21 = vld [vmem:[#allocation6 + $0x3c0] sm:$0xff]  ;;  %v516_v22 = vld [vmem:[#allocation6 + $0x3c8] sm:$0xff]  ;;  %v2302_v26 = vpack.c.bf16 %v498_v18, %v497_v16  ;;  %v2272_v27 = vpack.c.bf16 %v484_v20, %v483_v19  ;;  %v386_v30 = vld [vmem:[%s3249_s13 + $0x38] sm:$0xff] }
  0xf7   : > { %2289 = vmatprep.subr.bf16.mxu1 %v2288_v43  ;;  %v467_v24 = vld [vmem:[#allocation6 + $0x240] sm:$0xff]  ;;  %v384_v25 = vld [vmem:[%s3249_s13 + $0x28] sm:$0xff]  ;;  %v2304_v31 = vpack.c.bf16 %v516_v22, %v515_v21  ;;  %v485_v33 = vld [vmem:[#allocation6 + $0x2d0] sm:$0xff] }
  0xf8   : > { %716 = vmatmul.mubr.f32.vlgmr.msra.gmra.mrb[0].mxu0 %v379_v49  ;;  %v468_v28 = vld [vmem:[#allocation6 + $0x248] sm:$0xff]  ;;  %v499_v29 = vld [vmem:[#allocation6 + $0x340] sm:$0xff]  ;;  %v486_v34 = vld [vmem:[#allocation6 + $0x2d8] sm:$0xff] }
  0xf9   : > { %786 = vmatmul.mubr.f32.vlgmr.msra.gmra.mrb[0].mxu1 %v381_v50  ;;  %2259 = vmatpush3.bf16.msra.mxu0 %v2258_v51  ;;  %v500_v32 = vld [vmem:[#allocation6 + $0x348] sm:$0xff]  ;;  %v517_v35 = vld [vmem:[#allocation6 + $0x3d0] sm:$0xff]  ;;  %v518_v36 = vld [vmem:[#allocation6 + $0x3d8] sm:$0xff]  ;;  %v2274_v37 = vpack.c.bf16 %v468_v28, %v467_v24  ;;  %v2276_v39 = vpack.c.bf16 %v486_v34, %v485_v33 }
  0xfa   : > { %2291 = vmatpush3.bf16.msra.mxu1 %v2290_v52  ;;  %2261 = vmatprep.subr.bf16.mxu0 %v2260_v53  ;;  %v2306_v38 = vpack.c.bf16 %v500_v32, %v499_v29  ;;  %v469_v40 = vld [vmem:[#allocation6 + $0x250] sm:$0xff]  ;;  %v470_v41 = vld [vmem:[#allocation6 + $0x258] sm:$0xff]  ;;  %v2308_v43 = vpack.c.bf16 %v518_v36, %v517_v35  ;;  %v487_v45 = vld [vmem:[#allocation6 + $0x2e0] sm:$0xff] }
  0xfb   : > { %2293 = vmatprep.subr.bf16.mxu1 %v2292_v57  ;;  %855 = vmatprep.mubr.f32.mxu0 %v384_v25  ;;  %v501_v42 = vld [vmem:[#allocation6 + $0x350] sm:$0xff]  ;;  %v502_v44 = vld [vmem:[#allocation6 + $0x358] sm:$0xff]  ;;  %v488_v46 = vld [vmem:[#allocation6 + $0x2e8] sm:$0xff]  ;;  %v2278_v49 = vpack.c.bf16 %v470_v41, %v469_v40 }
  0xfc   : > { %925 = vmatprep.mubr.f32.mxu1 %v386_v30  ;;  %v519_v47 = vld [vmem:[#allocation6 + $0x3e0] sm:$0xff]  ;;  %v520_v48 = vld [vmem:[#allocation6 + $0x3e8] sm:$0xff]  ;;  %v2310_v50 = vpack.c.bf16 %v502_v44, %v501_v42  ;;  %v2280_v51 = vpack.c.bf16 %v488_v46, %v487_v45  ;;  %v489_v57 = vld [vmem:[#allocation6 + $0x2f0] sm:$0xff] }
  0xfd   : > { %2263 = vmatpush3.bf16.msra.mxu0 %v2262_v63  ;;  %v471_v52 = vld [vmem:[#allocation6 + $0x260] sm:$0xff]  ;;  %v472_v53 = vld [vmem:[#allocation6 + $0x268] sm:$0xff]  ;;  %v2312_v55 = vpack.c.bf16 %v520_v48, %v519_v47  ;;  %v490_v58 = vld [vmem:[#allocation6 + $0x2f8] sm:$0xff] }
  0xfe   : > { %2295 = vmatpush3.bf16.msra.mxu1 %v2294_v0  ;;  %2265 = vmatprep.subr.bf16.mxu0 %v2264_v1  ;;  %v503_v54 = vld [vmem:[#allocation6 + $0x360] sm:$0xff]  ;;  %v504_v56 = vld [vmem:[#allocation6 + $0x368] sm:$0xff]  ;;  %v521_v59 = vld [vmem:[#allocation6 + $0x3f0] sm:$0xff]  ;;  %v2282_v61 = vpack.c.bf16 %v472_v53, %v471_v52  ;;  %v2284_v63 = vpack.c.bf16 %v490_v58, %v489_v57 }
  0xff   : > { %2297 = vmatprep.subr.bf16.mxu1 %v2296_v5  ;;  %v522_v60 = vld [vmem:[#allocation6 + $0x3f8] sm:$0xff]  ;;  %v2314_v62 = vpack.c.bf16 %v504_v56, %v503_v54  ;;  %v473_v0 = vld [vmem:[#allocation6 + $0x270] sm:$0xff]  ;;  %v539_v5 = vld [vmem:[#allocation6 + $0x480] sm:$0xff] }
 0x100   : > { %v474_v1 = vld [vmem:[#allocation6 + $0x278] sm:$0xff]  ;;  %v505_v2 = vld [vmem:[#allocation6 + $0x370] sm:$0xff]  ;;  %v2316_v3 = vpack.c.bf16 %v522_v60, %v521_v59  ;;  %v540_v6 = vld [vmem:[#allocation6 + $0x488] sm:$0xff] }
 0x101   : > { %2267 = vmatpush3.bf16.msra.mxu0 %v2266_v11  ;;  %v506_v4 = vld [vmem:[#allocation6 + $0x378] sm:$0xff]  ;;  %v571_v7 = vld [vmem:[#allocation6 + $0x580] sm:$0xff]  ;;  %v572_v8 = vld [vmem:[#allocation6 + $0x588] sm:$0xff]  ;;  %v2286_v9 = vpack.c.bf16 %v474_v1, %v473_v0  ;;  %v2320_v11 = vpack.c.bf16 %v540_v6, %v539_v5 }
 0x102   : > { %2299 = vmatpush3.bf16.msra.mxu1 %v2298_v12  ;;  %2269 = vmatprep.subr.bf16.mxu0 %v2268_v13  ;;  %v2318_v10 = vpack.c.bf16 %v506_v4, %v505_v2  ;;  %v523_v12 = vld [vmem:[#allocation6 + $0x400] sm:$0xff]  ;;  %v524_v13 = vld [vmem:[#allocation6 + $0x408] sm:$0xff]  ;;  %v2352_v15 = vpack.c.bf16 %v572_v8, %v571_v7  ;;  %v542_v18 = vld [vmem:[#allocation6 + $0x498] sm:$0xff] }
 0x103   : > { %2301 = vmatprep.subr.bf16.mxu1 %v2300_v17  ;;  %v555_v14 = vld [vmem:[#allocation6 + $0x500] sm:$0xff]  ;;  %v556_v16 = vld [vmem:[#allocation6 + $0x508] sm:$0xff]  ;;  %v541_v17 = vld [vmem:[#allocation6 + $0x490] sm:$0xff]  ;;  %v2322_v22 = vpack.c.bf16 %v524_v13, %v523_v12 }
 0x104   : > { %v573_v19 = vld [vmem:[#allocation6 + $0x590] sm:$0xff]  ;;  %v574_v20 = vld [vmem:[#allocation6 + $0x598] sm:$0xff]  ;;  %v383_v21 = vld [vmem:[%s3249_s13 + $0x20] sm:$0xff]  ;;  %v2354_v24 = vpack.c.bf16 %v556_v16, %v555_v14  ;;  %v2324_v25 = vpack.c.bf16 %v542_v18, %v541_v17 }
 0x105   : > { %2271 = vmatpush3.bf16.msra.mxu0 %v2270_v23  ;;  %v385_v23 = vld [vmem:[%s3249_s13 + $0x30] sm:$0xff]  ;;  %v2356_v29 = vpack.c.bf16 %v574_v20, %v573_v19  ;;  %v558_v30 = vld [vmem:[#allocation6 + $0x518] sm:$0xff]  ;;  %v544_v32 = vld [vmem:[#allocation6 + $0x4a8] sm:$0xff] }
 0x106   : > { %2303 = vmatpush3.bf16.msra.mxu1 %v2302_v26  ;;  %2273 = vmatprep.subr.bf16.mxu0 %v2272_v27  ;;  %v525_v26 = vld [vmem:[#allocation6 + $0x410] sm:$0xff]  ;;  %v526_v27 = vld [vmem:[#allocation6 + $0x418] sm:$0xff]  ;;  %v575_v33 = vld [vmem:[#allocation6 + $0x5a0] sm:$0xff] }
 0x107   : > { %2305 = vmatprep.subr.bf16.mxu1 %v2304_v31  ;;  %v557_v28 = vld [vmem:[#allocation6 + $0x510] sm:$0xff]  ;;  %v543_v31 = vld [vmem:[#allocation6 + $0x4a0] sm:$0xff]  ;;  %v576_v34 = vld [vmem:[#allocation6 + $0x5a8] sm:$0xff]  ;;  %v2326_v36 = vpack.c.bf16 %v526_v27, %v525_v26 }
 0x108   : > { %v388_v35 = vld [vmem:[%s3249_s13 + $0x48] sm:$0xff]  ;;  %v527_v40 = vld [vmem:[#allocation6 + $0x420] sm:$0xff]  ;;  %v545_v45 = vld [vmem:[#allocation6 + $0x4b0] sm:$0xff] }
 0x109   : > { %2275 = vmatpush3.bf16.msra.mxu0 %v2274_v37  ;;  %v390_v37 = vld [vmem:[%s3249_s13 + $0x58] sm:$0xff]  ;;  %v528_v41 = vld [vmem:[#allocation6 + $0x428] sm:$0xff]  ;;  %v559_v42 = vld [vmem:[#allocation6 + $0x520] sm:$0xff] }
 0x10a   : > { %2307 = vmatpush3.bf16.msra.mxu1 %v2306_v38  ;;  %2277 = vmatprep.subr.bf16.mxu0 %v2276_v39  ;;  %v2358_v38 = vpack.c.bf16 %v558_v30, %v557_v28  ;;  %v2328_v39 = vpack.c.bf16 %v544_v32, %v543_v31  ;;  %v560_v44 = vld [vmem:[#allocation6 + $0x528] sm:$0xff]  ;;  %v546_v46 = vld [vmem:[#allocation6 + $0x4b8] sm:$0xff]  ;;  %v577_v47 = vld [vmem:[#allocation6 + $0x5b0] sm:$0xff] }
 0x10b   : > { %2309 = vmatprep.subr.bf16.mxu1 %v2308_v43  ;;  %v2360_v43 = vpack.c.bf16 %v576_v34, %v575_v33  ;;  %v578_v48 = vld [vmem:[#allocation6 + $0x5b8] sm:$0xff]  ;;  %v529_v52 = vld [vmem:[#allocation6 + $0x430] sm:$0xff]  ;;  %v547_v57 = vld [vmem:[#allocation6 + $0x4c0] sm:$0xff] }
 0x10c   : > { %v530_v53 = vld [vmem:[#allocation6 + $0x438] sm:$0xff]  ;;  %v561_v54 = vld [vmem:[#allocation6 + $0x530] sm:$0xff]  ;;  %v548_v58 = vld [vmem:[#allocation6 + $0x4c8] sm:$0xff] }
 0x10d   : > { %2279 = vmatpush3.bf16.msra.mxu0 %v2278_v49  ;;  %v2330_v49 = vpack.c.bf16 %v528_v41, %v527_v40  ;;  %v562_v56 = vld [vmem:[#allocation6 + $0x538] sm:$0xff]  ;;  %v579_v59 = vld [vmem:[#allocation6 + $0x5c0] sm:$0xff]  ;;  %v580_v60 = vld [vmem:[#allocation6 + $0x5c8] sm:$0xff] }
 0x10e   : > { %2311 = vmatpush3.bf16.msra.mxu1 %v2310_v50  ;;  %2281 = vmatprep.subr.bf16.mxu0 %v2280_v51  ;;  %v2362_v50 = vpack.c.bf16 %v560_v44, %v559_v42  ;;  %v2332_v51 = vpack.c.bf16 %v546_v46, %v545_v45  ;;  %v531_v0 = vld [vmem:[#allocation6 + $0x440] sm:$0xff]  ;;  %v532_v1 = vld [vmem:[#allocation6 + $0x448] sm:$0xff]  ;;  %v549_v5 = vld [vmem:[#allocation6 + $0x4d0] sm:$0xff] }
 0x10f   : > { %2313 = vmatprep.subr.bf16.mxu1 %v2312_v55  ;;  %v2364_v55 = vpack.c.bf16 %v578_v48, %v577_v47  ;;  %v563_v2 = vld [vmem:[#allocation6 + $0x540] sm:$0xff]  ;;  %v564_v4 = vld [vmem:[#allocation6 + $0x548] sm:$0xff]  ;;  %v550_v6 = vld [vmem:[#allocation6 + $0x4d8] sm:$0xff] }
 0x110   : > { %v581_v7 = vld [vmem:[#allocation6 + $0x5d0] sm:$0xff]  ;;  %v582_v8 = vld [vmem:[#allocation6 + $0x5d8] sm:$0xff]  ;;  %v551_v17 = vld [vmem:[#allocation6 + $0x4e0] sm:$0xff] }
 0x111   : > { %2283 = vmatpush3.bf16.msra.mxu0 %v2282_v61  ;;  %v2334_v61 = vpack.c.bf16 %v530_v53, %v529_v52  ;;  %v533_v12 = vld [vmem:[#allocation6 + $0x450] sm:$0xff]  ;;  %v534_v13 = vld [vmem:[#allocation6 + $0x458] sm:$0xff]  ;;  %v552_v18 = vld [vmem:[#allocation6 + $0x4e8] sm:$0xff] }
 0x112   : > { %2315 = vmatpush3.bf16.msra.mxu1 %v2314_v62  ;;  %2285 = vmatprep.subr.bf16.mxu0 %v2284_v63  ;;  %v2366_v62 = vpack.c.bf16 %v562_v56, %v561_v54  ;;  %v2336_v63 = vpack.c.bf16 %v548_v58, %v547_v57  ;;  %v565_v14 = vld [vmem:[#allocation6 + $0x550] sm:$0xff]  ;;  %v566_v16 = vld [vmem:[#allocation6 + $0x558] sm:$0xff]  ;;  %v583_v19 = vld [vmem:[#allocation6 + $0x5e0] sm:$0xff] }
 0x113   : > { %2317 = vmatprep.subr.bf16.mxu1 %v2316_v3  ;;  %v2368_v3 = vpack.c.bf16 %v580_v60, %v579_v59  ;;  %v584_v20 = vld [vmem:[#allocation6 + $0x5e8] sm:$0xff]  ;;  %v567_v26 = vld [vmem:[#allocation6 + $0x560] sm:$0xff]  ;;  %v554_v30 = vld [vmem:[#allocation6 + $0x4f8] sm:$0xff] }
 0x114   : > { %v2376_v27 = vpack.c.bf16 %v584_v20, %v583_v19  ;;  %v568_v28 = vld [vmem:[#allocation6 + $0x568] sm:$0xff]  ;;  %v585_v31 = vld [vmem:[#allocation6 + $0x5f0] sm:$0xff]  ;;  %v586_v32 = vld [vmem:[#allocation6 + $0x5f8] sm:$0xff] }
 0x115   : > { %2287 = vmatpush3.bf16.msra.mxu0 %v2286_v9  ;;  %v2338_v9 = vpack.c.bf16 %v532_v1, %v531_v0  ;;  %v2378_v34 = vpack.c.bf16 %v568_v28, %v567_v26  ;;  %v570_v40 = vld [vmem:[#allocation6 + $0x578] sm:$0xff]  ;;  %v603_v41 = vld [vmem:[#allocation6 + $0x680] sm:$0xff]  ;;  %v604_v42 = vld [vmem:[#allocation6 + $0x688] sm:$0xff] }
 0x116   : > { %2319 = vmatpush3.bf16.msra.mxu1 %v2318_v10  ;;  %2321 = vmatprep.subr.bf16.mxu0 %v2320_v11  ;;  %v2370_v10 = vpack.c.bf16 %v564_v4, %v563_v2  ;;  %v2340_v11 = vpack.c.bf16 %v550_v6, %v549_v5  ;;  %v636_v44 = vld [vmem:[#allocation6 + $0x788] sm:$0xff]  ;;  %v2384_v47 = vpack.c.bf16 %v604_v42, %v603_v41  ;;  %v587_v48 = vld [vmem:[#allocation6 + $0x600] sm:$0xff]  ;;  %v605_v53 = vld [vmem:[#allocation6 + $0x690] sm:$0xff] }
 0x117   : > { %2353 = vmatprep.subr.bf16.mxu1 %v2352_v15  ;;  %v2372_v15 = vpack.c.bf16 %v582_v8, %v581_v7  ;;  %v620_v52 = vld [vmem:[#allocation6 + $0x708] sm:$0xff]  ;;  %v606_v54 = vld [vmem:[#allocation6 + $0x698] sm:$0xff]  ;;  %v387_v57 = vld [vmem:[%s3249_s13 + $0x40] sm:$0xff] }
 0x118   : > { %856 = vmatmul.mubr.f32.vlgmr.msra.gmra.mrb[2].mxu0 %v383_v21  ;;  %v2342_v21 = vpack.c.bf16 %v534_v13, %v533_v12  ;;  %v638_v56 = vld [vmem:[#allocation6 + $0x798] sm:$0xff]  ;;  %v389_v59 = vld [vmem:[%s3249_s13 + $0x50] sm:$0xff]  ;;  %v608_v4 = vld [vmem:[#allocation6 + $0x6a8] sm:$0xff] }
 0x119   : > { %2323 = vmatpush3.bf16.msra.mxu0 %v2322_v22  ;;  %926 = vmatmul.mubr.f32.vlgmr.msra.gmra.mrb[2].mxu1 %v385_v23  ;;  %v2374_v22 = vpack.c.bf16 %v566_v16, %v565_v14  ;;  %v2344_v23 = vpack.c.bf16 %v552_v18, %v551_v17  ;;  %v621_v0 = vld [vmem:[#allocation6 + $0x710] sm:$0xff]  ;;  %v622_v2 = vld [vmem:[#allocation6 + $0x718] sm:$0xff]  ;;  %v639_v5 = vld [vmem:[#allocation6 + $0x7a0] sm:$0xff] }
 0x11a   : > { %2355 = vmatpush3.bf16.msra.mxu1 %v2354_v24  ;;  %2325 = vmatprep.subr.bf16.mxu0 %v2324_v25  ;;  %v535_v24 = vld [vmem:[#allocation6 + $0x460] sm:$0xff]  ;;  %v536_v25 = vld [vmem:[#allocation6 + $0x468] sm:$0xff]  ;;  %v609_v17 = vld [vmem:[#allocation6 + $0x6b0] sm:$0xff] }
 0x11b   : > { %2357 = vmatprep.subr.bf16.mxu1 %v2356_v29  ;;  %995 = vmatprep.mubr.f32.mxu0 %v388_v35  ;;  %v553_v29 = vld [vmem:[#allocation6 + $0x4f0] sm:$0xff]  ;;  %v2346_v33 = vpack.c.bf16 %v536_v25, %v535_v24  ;;  %v640_v6 = vld [vmem:[#allocation6 + $0x7a8] sm:$0xff]  ;;  %v591_v12 = vld [vmem:[#allocation6 + $0x620] sm:$0xff] }
 0x11c   : > { %1065 = vmatprep.mubr.f32.mxu1 %v390_v37  ;;  %v2348_v35 = vpack.c.bf16 %v554_v30, %v553_v29  ;;  %v538_v37 = vld [vmem:[#allocation6 + $0x478] sm:$0xff]  ;;  %v392_v7 = vld [vmem:[%s3249_s13 + $0x68] sm:$0xff]  ;;  %v623_v14 = vld [vmem:[#allocation6 + $0x720] sm:$0xff] }
 0x11d   : > { %2327 = vmatpush3.bf16.msra.mxu0 %v2326_v36  ;;  %v537_v36 = vld [vmem:[#allocation6 + $0x470] sm:$0xff]  ;;  %v592_v13 = vld [vmem:[#allocation6 + $0x628] sm:$0xff]  ;;  %v610_v18 = vld [vmem:[#allocation6 + $0x6b8] sm:$0xff] }
 0x11e   : > { %2359 = vmatpush3.bf16.msra.mxu1 %v2358_v38  ;;  %2329 = vmatprep.subr.bf16.mxu0 %v2328_v39  ;;  %v569_v38 = vld [vmem:[#allocation6 + $0x570] sm:$0xff]  ;;  %v2380_v39 = vpack.c.bf16 %v586_v32, %v585_v31  ;;  %v2350_v45 = vpack.c.bf16 %v538_v37, %v537_v36  ;;  %v624_v16 = vld [vmem:[#allocation6 + $0x728] sm:$0xff]  ;;  %v642_v20 = vld [vmem:[#allocation6 + $0x7b8] sm:$0xff] }
 0x11f   : > { %2361 = vmatprep.subr.bf16.mxu1 %v2360_v43  ;;  %v635_v43 = vld [vmem:[#allocation6 + $0x780] sm:$0xff]  ;;  %v2382_v46 = vpack.c.bf16 %v570_v40, %v569_v38  ;;  %v641_v19 = vld [vmem:[#allocation6 + $0x7b0] sm:$0xff]  ;;  %v594_v25 = vld [vmem:[#allocation6 + $0x638] sm:$0xff] }
 0x120   : > { %v593_v24 = vld [vmem:[#allocation6 + $0x630] sm:$0xff]  ;;  %v626_v28 = vld [vmem:[#allocation6 + $0x738] sm:$0xff]  ;;  %v611_v29 = vld [vmem:[#allocation6 + $0x6c0] sm:$0xff] }
 0x121   : > { %2331 = vmatpush3.bf16.msra.mxu0 %v2330_v49  ;;  %v588_v49 = vld [vmem:[#allocation6 + $0x608] sm:$0xff]  ;;  %v625_v26 = vld [vmem:[#allocation6 + $0x730] sm:$0xff]  ;;  %v643_v31 = vld [vmem:[#allocation6 + $0x7c0] sm:$0xff] }
 0x122   : > { %2363 = vmatpush3.bf16.msra.mxu1 %v2362_v50  ;;  %2333 = vmatprep.subr.bf16.mxu0 %v2332_v51  ;;  %v619_v50 = vld [vmem:[#allocation6 + $0x700] sm:$0xff]  ;;  %v2416_v51 = vpack.c.bf16 %v636_v44, %v635_v43  ;;  %v2386_v58 = vpack.c.bf16 %v588_v49, %v587_v48  ;;  %v612_v30 = vld [vmem:[#allocation6 + $0x6c8] sm:$0xff]  ;;  %v613_v41 = vld [vmem:[#allocation6 + $0x6d0] sm:$0xff] }
 0x123   : > { %2365 = vmatprep.subr.bf16.mxu1 %v2364_v55  ;;  %v637_v55 = vld [vmem:[#allocation6 + $0x790] sm:$0xff]  ;;  %v2418_v60 = vpack.c.bf16 %v620_v52, %v619_v50  ;;  %v644_v32 = vld [vmem:[#allocation6 + $0x7c8] sm:$0xff]  ;;  %v595_v36 = vld [vmem:[#allocation6 + $0x640] sm:$0xff] }
 0x124   : > { %v2420_v1 = vpack.c.bf16 %v638_v56, %v637_v55  ;;  %v596_v37 = vld [vmem:[#allocation6 + $0x648] sm:$0xff]  ;;  %v627_v38 = vld [vmem:[#allocation6 + $0x740] sm:$0xff]  ;;  %v614_v42 = vld [vmem:[#allocation6 + $0x6d8] sm:$0xff] }
 0x125   : > { %2335 = vmatpush3.bf16.msra.mxu0 %v2334_v61  ;;  %v2388_v61 = vpack.c.bf16 %v606_v54, %v605_v53  ;;  %v628_v40 = vld [vmem:[#allocation6 + $0x748] sm:$0xff]  ;;  %v645_v43 = vld [vmem:[#allocation6 + $0x7d0] sm:$0xff]  ;;  %v646_v44 = vld [vmem:[#allocation6 + $0x7d8] sm:$0xff] }
 0x126   : > { %2367 = vmatpush3.bf16.msra.mxu1 %v2366_v62  ;;  %2337 = vmatprep.subr.bf16.mxu0 %v2336_v63  ;;  %v589_v62 = vld [vmem:[#allocation6 + $0x610] sm:$0xff]  ;;  %v590_v63 = vld [vmem:[#allocation6 + $0x618] sm:$0xff]  ;;  %v615_v53 = vld [vmem:[#allocation6 + $0x6e0] sm:$0xff] }
 0x127   : > { %2369 = vmatprep.subr.bf16.mxu1 %v2368_v3  ;;  %v607_v3 = vld [vmem:[#allocation6 + $0x6a0] sm:$0xff]  ;;  %v2390_v8 = vpack.c.bf16 %v590_v63, %v589_v62  ;;  %v597_v48 = vld [vmem:[#allocation6 + $0x650] sm:$0xff]  ;;  %v598_v49 = vld [vmem:[#allocation6 + $0x658] sm:$0xff] }
 0x128   : > { %v629_v50 = vld [vmem:[#allocation6 + $0x750] sm:$0xff]  ;;  %v630_v52 = vld [vmem:[#allocation6 + $0x758] sm:$0xff]  ;;  %v616_v54 = vld [vmem:[#allocation6 + $0x6e8] sm:$0xff] }
 0x129   : > { %2339 = vmatpush3.bf16.msra.mxu0 %v2338_v9  ;;  %v394_v9 = vld [vmem:[%s3249_s13 + $0x78] sm:$0xff]  ;;  %v647_v55 = vld [vmem:[#allocation6 + $0x7e0] sm:$0xff]  ;;  %v648_v56 = vld [vmem:[#allocation6 + $0x7e8] sm:$0xff] }
 0x12a   : > { %2371 = vmatpush3.bf16.msra.mxu1 %v2370_v10  ;;  %2341 = vmatprep.subr.bf16.mxu0 %v2340_v11  ;;  %v2422_v10 = vpack.c.bf16 %v622_v2, %v621_v0  ;;  %v2392_v11 = vpack.c.bf16 %v608_v4, %v607_v3  ;;  %v631_v62 = vld [vmem:[#allocation6 + $0x760] sm:$0xff]  ;;  %v2440_v63 = vpack.c.bf16 %v648_v56, %v647_v55  ;;  %v632_v0 = vld [vmem:[#allocation6 + $0x768] sm:$0xff]  ;;  %v618_v2 = vld [vmem:[#allocation6 + $0x6f8] sm:$0xff] }
 0x12b   : > { %2373 = vmatprep.subr.bf16.mxu1 %v2372_v15  ;;  %v2424_v15 = vpack.c.bf16 %v640_v6, %v639_v5  ;;  %v649_v3 = vld [vmem:[#allocation6 + $0x7f0] sm:$0xff]  ;;  %v650_v4 = vld [vmem:[#allocation6 + $0x7f8] sm:$0xff]  ;;  %v2442_v6 = vpack.c.bf16 %v632_v0, %v631_v62  ;;  %v1253_v0 = vld [vmem:[%s3259_s9 + $0x128] sm:$0xff] }
 0x12c   : > { %v1246_v62 = vld [vmem:[%s3259_s9 + $0xf0] sm:$0xff] }
 0x12d   : > { %2343 = vmatpush3.bf16.msra.mxu0 %v2342_v21  ;;  %v2394_v21 = vpack.c.bf16 %v592_v13, %v591_v12  ;;  %v634_v12 = vld [vmem:[#allocation6 + $0x778] sm:$0xff] }
 0x12e   : > { %2375 = vmatpush3.bf16.msra.mxu1 %v2374_v22  ;;  %2345 = vmatprep.subr.bf16.mxu0 %v2344_v23  ;;  %v2426_v22 = vpack.c.bf16 %v624_v16, %v623_v14  ;;  %v2396_v23 = vpack.c.bf16 %v610_v18, %v609_v17  ;;  %v393_v16 = vld [vmem:[%s3249_s13 + $0x70] sm:$0xff]  ;;  %v1217_v17 = vld [vmem:[%s3259_s9 + $0x8] sm:$0xff] }
 0x12f   : > { %2377 = vmatprep.subr.bf16.mxu1 %v2376_v27  ;;  %v2428_v27 = vpack.c.bf16 %v642_v20, %v641_v19  ;;  %v1221_v18 = vld [vmem:[%s3259_s9 + $0x28] sm:$0xff]  ;;  %v1219_v19 = vld [vmem:[%s3259_s9 + $0x18] sm:$0xff] }
 0x130   : > { %v2448_v20 = vpack.c.bf16 %v1221_v18, %v1217_v17  ;;  %v1256_v18 = vld [vmem:[%s3259_s9 + $0x140] sm:$0xff] }
 0x131   : > { %2347 = vmatpush3.bf16.msra.mxu0 %v2346_v33  ;;  %v2398_v33 = vpack.c.bf16 %v594_v25, %v593_v24 }
 0x132   : > { %2379 = vmatpush3.bf16.msra.mxu1 %v2378_v34  ;;  %2349 = vmatprep.subr.bf16.mxu0 %v2348_v35  ;;  %v2430_v34 = vpack.c.bf16 %v626_v28, %v625_v26  ;;  %v2400_v35 = vpack.c.bf16 %v612_v30, %v611_v29  ;;  %v1218_v26 = vld [vmem:[%s3259_s9 + $0x10] sm:$0xff]  ;;  %v1225_v28 = vld [vmem:[%s3259_s9 + $0x48] sm:$0xff] }
 0x133   : > { %2381 = vmatprep.subr.bf16.mxu1 %v2380_v39  ;;  %v2432_v39 = vpack.c.bf16 %v644_v32, %v643_v31  ;;  %v1229_v30 = vld [vmem:[%s3259_s9 + $0x68] sm:$0xff]  ;;  %v1227_v31 = vld [vmem:[%s3259_s9 + $0x58] sm:$0xff] }
 0x134   : > { %v1231_v32 = vld [vmem:[%s3259_s9 + $0x78] sm:$0xff] }
 0x135   : > { %2351 = vmatpush3.bf16.msra.mxu0 %v2350_v45  ;;  %v2402_v45 = vpack.c.bf16 %v596_v37, %v595_v36  ;;  %v1228_v36 = vld [vmem:[%s3259_s9 + $0x60] sm:$0xff]  ;;  %v1226_v37 = vld [vmem:[%s3259_s9 + $0x50] sm:$0xff] }
 0x136   : > { %2383 = vmatpush3.bf16.msra.mxu1 %v2382_v46  ;;  %2385 = vmatprep.subr.bf16.mxu0 %v2384_v47  ;;  %v2434_v46 = vpack.c.bf16 %v628_v40, %v627_v38  ;;  %v2404_v47 = vpack.c.bf16 %v614_v42, %v613_v41  ;;  %v1233_v40 = vld [vmem:[%s3259_s9 + $0x88] sm:$0xff] }
 0x137   : > { %2417 = vmatprep.subr.bf16.mxu1 %v2416_v51  ;;  %v2436_v51 = vpack.c.bf16 %v646_v44, %v645_v43  ;;  %v1237_v41 = vld [vmem:[%s3259_s9 + $0xa8] sm:$0xff]  ;;  %v1235_v44 = vld [vmem:[%s3259_s9 + $0x98] sm:$0xff] }
 0x138   : > { %996 = vmatmul.mubr.f32.vlgmr.msra.gmra.mrb[4].mxu0 %v387_v57  ;;  %v2406_v57 = vpack.c.bf16 %v598_v49, %v597_v48  ;;  %v2456_v43 = vpack.c.bf16 %v1237_v41, %v1233_v40  ;;  %v1236_v48 = vld [vmem:[%s3259_s9 + $0xa0] sm:$0xff]  ;;  %v1234_v49 = vld [vmem:[%s3259_s9 + $0x90] sm:$0xff]  ;;  %v1279_v41 = vld [vmem:[%s3259_s9 + $0x1f8] sm:$0xff] }
 0x139   : > { %2387 = vmatpush3.bf16.msra.mxu0 %v2386_v58  ;;  %1066 = vmatmul.mubr.f32.vlgmr.msra.gmra.mrb[4].mxu1 %v389_v59  ;;  %v2438_v58 = vpack.c.bf16 %v630_v52, %v629_v50  ;;  %v2408_v59 = vpack.c.bf16 %v616_v54, %v615_v53  ;;  %v1238_v50 = vld [vmem:[%s3259_s9 + $0xb0] sm:$0xff]  ;;  %v1241_v52 = vld [vmem:[%s3259_s9 + $0xc8] sm:$0xff]  ;;  %v1243_v54 = vld [vmem:[%s3259_s9 + $0xd8] sm:$0xff] }
 0x13a   : > { %2419 = vmatpush3.bf16.msra.mxu1 %v2418_v60  ;;  %2389 = vmatprep.subr.bf16.mxu0 %v2388_v61  ;;  %v599_v60 = vld [vmem:[#allocation6 + $0x660] sm:$0xff]  ;;  %v600_v61 = vld [vmem:[#allocation6 + $0x668] sm:$0xff]  ;;  %v2490_v55 = vpack.c.bf16 %v1238_v50, %v1234_v49  ;;  %v2971_v49 = vmov 0.0  }
 0x13b   : > { %2421 = vmatprep.subr.bf16.mxu1 %v2420_v1  ;;  %1135 = vmatprep.mubr.f32.mxu0 %v392_v7  ;;  %v617_v1 = vld [vmem:[#allocation6 + $0x6f0] sm:$0xff]  ;;  %v2410_v5 = vpack.c.bf16 %v600_v61, %v599_v60  ;;  %v1245_v53 = vld [vmem:[%s3259_s9 + $0xe8] sm:$0xff] }
 0x13c   : > { %1205 = vmatprep.mubr.f32.mxu1 %v394_v9  ;;  %v2412_v7 = vpack.c.bf16 %v618_v2, %v617_v1  ;;  %v602_v9 = vld [vmem:[#allocation6 + $0x678] sm:$0xff]  ;;  %v2460_v56 = vpack.c.bf16 %v1245_v53, %v1241_v52  ;;  %v1242_v61 = vld [vmem:[%s3259_s9 + $0xd0] sm:$0xff] }
 0x13d   : > { %2391 = vmatpush3.bf16.msra.mxu0 %v2390_v8  ;;  %v601_v8 = vld [vmem:[#allocation6 + $0x670] sm:$0xff]  ;;  %v1251_v1 = vld [vmem:[%s3259_s9 + $0x118] sm:$0xff] }
 0x13e   : > { %2423 = vmatpush3.bf16.msra.mxu1 %v2422_v10  ;;  %2393 = vmatprep.subr.bf16.mxu0 %v2392_v11  ;;  %v2444_v10 = vpack.c.bf16 %v650_v4, %v649_v3  ;;  %v633_v11 = vld [vmem:[#allocation6 + $0x770] sm:$0xff]  ;;  %v2414_v13 = vpack.c.bf16 %v602_v9, %v601_v8  ;;  %v1255_v2 = vld [vmem:[%s3259_s9 + $0x138] sm:$0xff]  ;;  %v2494_v4 = vpack.c.bf16 %v1246_v62, %v1242_v61 }
 0x13f   : > { %2425 = vmatprep.subr.bf16.mxu1 %v2424_v15  ;;  %v2446_v14 = vpack.c.bf16 %v634_v12, %v633_v11  ;;  %v391_v15 = vld [vmem:[%s3249_s13 + $0x60] sm:$0xff]  ;;  %v1250_v8 = vld [vmem:[%s3259_s9 + $0x110] sm:$0xff]  ;;  %v2496_v9 = vpack.c.bf16 %v1255_v2, %v1251_v1  ;;  %v1257_v11 = vld [vmem:[%s3259_s9 + $0x148] sm:$0xff] }
 0x140   : > { %v1261_v12 = vld [vmem:[%s3259_s9 + $0x168] sm:$0xff] }
 0x141   : > { %2395 = vmatpush3.bf16.msra.mxu0 %v2394_v21  ;;  %v1223_v21 = vld [vmem:[%s3259_s9 + $0x38] sm:$0xff]  ;;  %v2468_v17 = vpack.c.bf16 %v1261_v12, %v1257_v11 }
 0x142   : > { %2427 = vmatpush3.bf16.msra.mxu1 %v2426_v22  ;;  %2397 = vmatprep.subr.bf16.mxu0 %v2396_v23  ;;  %v1216_v22 = vld [vmem:[%s3259_s9] sm:$0xff]  ;;  %v2480_v24 = vpack.c.bf16 %v1223_v21, %v1219_v19  ;;  %v1258_v21 = vld [vmem:[%s3259_s9 + $0x150] sm:$0xff] }
 0x143   : > { %2429 = vmatprep.subr.bf16.mxu1 %v2428_v27  ;;  %v1220_v23 = vld [vmem:[%s3259_s9 + $0x20] sm:$0xff]  ;;  %v1222_v27 = vld [vmem:[%s3259_s9 + $0x30] sm:$0xff] }
 0x144   : > { %v2450_v25 = vpack.c.bf16 %v1220_v23, %v1216_v22  ;;  %v2482_v29 = vpack.c.bf16 %v1222_v27, %v1218_v26  ;;  %v1260_v19 = vld [vmem:[%s3259_s9 + $0x160] sm:$0xff]  ;;  %v1262_v22 = vld [vmem:[%s3259_s9 + $0x170] sm:$0xff]  ;;  %v1269_v26 = vld [vmem:[%s3259_s9 + $0x1a8] sm:$0xff] }
 0x145   : > { %2399 = vmatpush3.bf16.msra.mxu0 %v2398_v33  ;;  %v2452_v33 = vpack.c.bf16 %v1229_v30, %v1225_v28  ;;  %v2470_v23 = vpack.c.bf16 %v1260_v19, %v1256_v18  ;;  %v1267_v27 = vld [vmem:[%s3259_s9 + $0x198] sm:$0xff]  ;;  %v1264_v30 = vld [vmem:[%s3259_s9 + $0x180] sm:$0xff]  ;;  %v1214_v19 = vld [vmem:[#allocation2 + $0x10] sm:$0xff] }
 0x146   : > { %2431 = vmatpush3.bf16.msra.mxu1 %v2430_v34  ;;  %2401 = vmatprep.subr.bf16.mxu0 %v2400_v35  ;;  %v2484_v34 = vpack.c.bf16 %v1231_v32, %v1227_v31  ;;  %v1224_v35 = vld [vmem:[%s3259_s9 + $0x40] sm:$0xff] }
 0x147   : > { %2433 = vmatprep.subr.bf16.mxu1 %v2432_v39  ;;  %v2454_v38 = vpack.c.bf16 %v1228_v36, %v1224_v35  ;;  %v1230_v39 = vld [vmem:[%s3259_s9 + $0x70] sm:$0xff]  ;;  %v1268_v31 = vld [vmem:[%s3259_s9 + $0x1a0] sm:$0xff] }
 0x148   : > { %v2486_v42 = vpack.c.bf16 %v1230_v39, %v1226_v37  ;;  %v1270_v35 = vld [vmem:[%s3259_s9 + $0x1b0] sm:$0xff]  ;;  %v1273_v37 = vld [vmem:[%s3259_s9 + $0x1c8] sm:$0xff]  ;;  %v1275_v39 = vld [vmem:[%s3259_s9 + $0x1d8] sm:$0xff] }
 0x149   : > { %2403 = vmatpush3.bf16.msra.mxu0 %v2402_v45  ;;  %v1239_v45 = vld [vmem:[%s3259_s9 + $0xb8] sm:$0xff]  ;;  %v1212_v18 = vld [vmem:[#allocation2] sm:$0xff] }
 0x14a   : > { %2435 = vmatpush3.bf16.msra.mxu1 %v2434_v46  ;;  %2405 = vmatprep.subr.bf16.mxu0 %v2404_v47  ;;  %v1232_v46 = vld [vmem:[%s3259_s9 + $0x80] sm:$0xff]  ;;  %v2488_v47 = vpack.c.bf16 %v1239_v45, %v1235_v44  ;;  %v2508_v44 = vpack.c.bf16 %v1279_v41, %v1275_v39  ;;  %v1486_v41 = vld [vmem:[#allocation10 + $0x90] sm:$0xff] (!%p1833_p7) }
 0x14b   : > { %2437 = vmatprep.subr.bf16.mxu1 %v2436_v51  ;;  %v2458_v51 = vpack.c.bf16 %v1236_v48, %v1232_v46  ;;  %v1274_v46 = vld [vmem:[%s3259_s9 + $0x1d0] sm:$0xff]  ;;  %v1500_v39 = vld [vmem:[#allocation10 + $0x100] sm:$0xff] (!%p1833_p7) }
 0x14d   : > { %2407 = vmatpush3.bf16.msra.mxu0 %v2406_v57  ;;  %v1247_v57 = vld [vmem:[%s3259_s9 + $0xf8] sm:$0xff] }
 0x14e   : > { %2439 = vmatpush3.bf16.msra.mxu1 %v2438_v58  ;;  %2409 = vmatprep.subr.bf16.mxu0 %v2408_v59  ;;  %v1240_v58 = vld [vmem:[%s3259_s9 + $0xc0] sm:$0xff]  ;;  %v2492_v60 = vpack.c.bf16 %v1247_v57, %v1243_v54 }
 0x14f   : > { %2441 = vmatprep.subr.bf16.mxu1 %v2440_v63  ;;  %v1244_v59 = vld [vmem:[%s3259_s9 + $0xe0] sm:$0xff]  ;;  %v1249_v63 = vld [vmem:[%s3259_s9 + $0x108] sm:$0xff] }
 0x150   : > { %v2462_v3 = vpack.c.bf16 %v1244_v59, %v1240_v58 }
 0x151   : > { %2411 = vmatpush3.bf16.msra.mxu0 %v2410_v5  ;;  %v2464_v5 = vpack.c.bf16 %v1253_v0, %v1249_v63 }
 0x152   : > { %2443 = vmatpush3.bf16.msra.mxu1 %v2442_v6  ;;  %2413 = vmatprep.subr.bf16.mxu0 %v2412_v7  ;;  %v1248_v6 = vld [vmem:[%s3259_s9 + $0x100] sm:$0xff] }
 0x153   : > { %2445 = vmatprep.subr.bf16.mxu1 %v2444_v10  ;;  %v1252_v7 = vld [vmem:[%s3259_s9 + $0x120] sm:$0xff]  ;;  %v1254_v10 = vld [vmem:[%s3259_s9 + $0x130] sm:$0xff] }
 0x155   : > { %2415 = vmatpush3.bf16.msra.mxu0 %v2414_v13  ;;  %v1259_v13 = vld [vmem:[%s3259_s9 + $0x158] sm:$0xff] }
 0x156   : > { %2447 = vmatpush3.bf16.msra.mxu1 %v2446_v14  ;;  %2449 = vmatprep.subr.bf16.mxu0 %v2448_v20  ;;  %v1263_v14 = vld [vmem:[%s3259_s9 + $0x178] sm:$0xff] }
 0x157   : > { %2481 = vmatprep.subr.bf16.mxu1 %v2480_v24  ;;  %v2500_v20 = vpack.c.bf16 %v1263_v14, %v1259_v13  ;;  %v2502_v24 = vpack.c.bf16 %v1262_v22, %v1258_v21  ;;  %v1215_v21 = vld [vmem:[#allocation2 + $0x18] sm:$0xff] }
 0x158   : > { %1136 = vmatmul.mubr.f32.vlgmr.msra.gmra.mrb[6].mxu0 %v391_v15  ;;  %v2466_v15 = vpack.c.bf16 %v1252_v7, %v1248_v6 }
 0x159   : > { %1206 = vmatmul.mubr.f32.vlgmr.msra.gmra.mrb[6].mxu1 %v393_v16  ;;  %2451 = vmatpush1.bf16.msra.mxu0 %v2450_v25  ;;  %v2498_v16 = vpack.c.bf16 %v1254_v10, %v1250_v8  ;;  %v1265_v25 = vld [vmem:[%s3259_s9 + $0x188] sm:$0xff] }
 0x15a   : > { %2483 = vmatpush1.bf16.msra.mxu1 %v2482_v29  ;;  %2453 = vmatprep.subr.bf16.mxu0 %v2452_v33  ;;  %v2472_v28 = vpack.c.bf16 %v1269_v26, %v1265_v25  ;;  %v1271_v29 = vld [vmem:[%s3259_s9 + $0x1b8] sm:$0xff]  ;;  %v2474_v33 = vpack.c.bf16 %v1268_v31, %v1264_v30  ;;  %v1484_v30 = vld [vmem:[#allocation10 + $0x80] sm:$0xff] (!%p1833_p7)  ;;  %v1485_v31 = vld [vmem:[#allocation10 + $0x88] sm:$0xff] (!%p1833_p7) }
 0x15b   : > { %2485 = vmatprep.subr.bf16.mxu1 %v2484_v34  ;;  %v2504_v32 = vpack.c.bf16 %v1271_v29, %v1267_v27  ;;  %v1266_v34 = vld [vmem:[%s3259_s9 + $0x190] sm:$0xff]  ;;  %1344 = vmatprep.mubr.f32.mxu0 %v2971_v49 }
 0x15c   : > { %v2506_v36 = vpack.c.bf16 %v1270_v35, %v1266_v34  ;;  %1415 = vmatprep.mubr.f32.mxu1 %v2971_v49  ;;  %v1469_v34 = vld [vmem:[#allocation10 + $0x8] sm:$0xff] (!%p1833_p7)  ;;  %v1516_v35 = vld [vmem:[#allocation10 + $0x180] sm:$0xff] (!%p1833_p7)  ;;  %v1519_v49 = vld [vmem:[#allocation10 + $0x198] sm:$0xff] (!%p1833_p7) }
 0x15d   : > { %2455 = vmatpush1.bf16.msra.mxu0 %v2454_v38  ;;  %v1277_v38 = vld [vmem:[%s3259_s9 + $0x1e8] sm:$0xff] }
 0x15e   : > { %2487 = vmatpush1.bf16.msra.mxu1 %v2486_v42  ;;  %2457 = vmatprep.subr.bf16.mxu0 %v2456_v43  ;;  %v2476_v40 = vpack.c.bf16 %v1277_v38, %v1273_v37  ;;  %v1272_v42 = vld [vmem:[%s3259_s9 + $0x1c0] sm:$0xff] }
 0x15f   : > { %2489 = vmatprep.subr.bf16.mxu1 %v2488_v47  ;;  %v1276_v43 = vld [vmem:[%s3259_s9 + $0x1e0] sm:$0xff]  ;;  %v1278_v47 = vld [vmem:[%s3259_s9 + $0x1f0] sm:$0xff] }
 0x160   : > { %v2478_v45 = vpack.c.bf16 %v1276_v43, %v1272_v42  ;;  %v2510_v48 = vpack.c.bf16 %v1278_v47, %v1274_v46  ;;  %v1487_v43 = vld [vmem:[#allocation10 + $0x98] sm:$0xff] (!%p1833_p7) }
 0x161   : > { %2459 = vmatpush1.bf16.msra.mxu0 %v2458_v51  ;;  %v2516_v46 = vpack.c.bf16 (!%p1833_p7), %v1487_v43, %v1486_v41  ;;  %v1529_v43 = vld [vmem:[#allocation10 + $0x1e8] sm:$0xff] (!%p1833_p7) }
 0x162   : > { %2491 = vmatpush1.bf16.msra.mxu1 %v2490_v55  ;;  %2461 = vmatprep.subr.bf16.mxu0 %v2460_v56 }
 0x163   : > { %2493 = vmatprep.subr.bf16.mxu1 %v2492_v60 }
 0x165   : > { %2463 = vmatpush1.bf16.msra.mxu0 %v2462_v3 }
 0x166   : > { %2495 = vmatpush1.bf16.msra.mxu1 %v2494_v4  ;;  %2465 = vmatprep.subr.bf16.mxu0 %v2464_v5 }
 0x167   : > { %2497 = vmatprep.subr.bf16.mxu1 %v2496_v9 }
 0x169   : > { %2467 = vmatpush1.bf16.msra.mxu0 %v2466_v15 }
 0x16a   : > { %2499 = vmatpush1.bf16.msra.mxu1 %v2498_v16  ;;  %2469 = vmatprep.subr.bf16.mxu0 %v2468_v17 }
 0x16b   : > { %2501 = vmatprep.subr.bf16.mxu1 %v2500_v20  ;;  %v1213_v20 = vld [vmem:[#allocation2 + $0x8] sm:$0xff] }
 0x16d   : > { %2471 = vmatpush1.bf16.msra.mxu0 %v2470_v23 }
 0x16e   : > { %2503 = vmatpush1.bf16.msra.mxu1 %v2502_v24  ;;  %2473 = vmatprep.subr.bf16.mxu0 %v2472_v28 }
 0x16f   : > { %2505 = vmatprep.subr.bf16.mxu1 %v2504_v32  ;;  %v1468_v32 = vld [vmem:[#allocation10] sm:$0xff] (!%p1833_p7) }
 0x170   : > { %v2514_v37 = vpack.c.bf16 (!%p1833_p7), %v1469_v34, %v1468_v32  ;;  %v1479_v34 = vld [vmem:[#allocation10 + $0x58] sm:$0xff] (!%p1833_p7) }
 0x171   : > { %2475 = vmatpush1.bf16.msra.mxu0 %v2474_v33  ;;  %v2512_v33 = vpack.c.bf16 (!%p1833_p7), %v1485_v31, %v1484_v30 }
 0x172   : > { %2507 = vmatpush1.bf16.msra.mxu1 %v2506_v36  ;;  %2477 = vmatprep.subr.bf16.mxu0 %v2476_v40  ;;  %v1517_v36 = vld [vmem:[#allocation10 + $0x188] sm:$0xff] (!%p1833_p7) }
 0x173   : > { %2509 = vmatprep.subr.bf16.mxu1 %v2508_v44  ;;  %v2544_v38 = vpack.c.bf16 (!%p1833_p7), %v1517_v36, %v1516_v35  ;;  %v1501_v40 = vld [vmem:[#allocation10 + $0x108] sm:$0xff] (!%p1833_p7)  ;;  %v1470_v44 = vld [vmem:[#allocation10 + $0x10] sm:$0xff] (!%p1833_p7) }
 0x174   : > { %v2546_v42 = vpack.c.bf16 (!%p1833_p7), %v1501_v40, %v1500_v39  ;;  %v1510_v35 = vld [vmem:[#allocation10 + $0x150] sm:$0xff] (!%p1833_p7)  ;;  %v1497_v39 = vld [vmem:[#allocation10 + $0xe8] sm:$0xff] (!%p1833_p7) }
 0x175   : > { %2479 = vmatpush1.bf16.msra.mxu0 %v2478_v45  ;;  %v1471_v45 = vld [vmem:[#allocation10 + $0x18] sm:$0xff] (!%p1833_p7) }
 0x176   : > { %2511 = vmatpush1.bf16.msra.mxu1 %v2510_v48  ;;  %2513 = vmatprep.subr.bf16.mxu0 (!%p1833_p7), %v2512_v33  ;;  %v2518_v47 = vpack.c.bf16 (!%p1833_p7), %v1471_v45, %v1470_v44  ;;  %v1518_v48 = vld [vmem:[#allocation10 + $0x190] sm:$0xff] (!%p1833_p7) }
 0x177   : > { %2545 = vmatprep.subr.bf16.mxu1 (!%p1833_p7), %v2544_v38  ;;  %v1478_v33 = vld [vmem:[#allocation10 + $0x50] sm:$0xff] (!%p1833_p7)  ;;  %v1496_v38 = vld [vmem:[#allocation10 + $0xe0] sm:$0xff] (!%p1833_p7) }
 0x178   : > { %v2534_v45 = vpack.c.bf16 (!%p1833_p7), %v1479_v34, %v1478_v33 }
 0x1cb   : > { %v1874_v50 = vpop.f32.mrb[0].mxu0 }
 0x1cc   : > { %v1909_v51 = vpop.f32.mrb[0].mxu1  ;;  %v1875_v52 = vpop.f32.mrb[1].mxu0 }
 0x1cd   : > { %v1876_v53 = vadd.f32 %v1875_v52, %v1874_v50  ;;  %v1910_v54 = vpop.f32.mrb[1].mxu1  ;;  %v1502_v50 = vld [vmem:[#allocation10 + $0x110] sm:$0xff] (!%p1833_p7)  ;;  %v1503_v52 = vld [vmem:[#allocation10 + $0x118] sm:$0xff] (!%p1833_p7) }
 0x1ce   : > { %v1911_v55 = vadd.f32 %v1910_v54, %v1909_v51  ;;  %v2548_v51 = vpack.c.bf16 (!%p1833_p7), %v1519_v49, %v1518_v48  ;;  %v1489_v54 = vld [vmem:[#allocation10 + $0xa8] sm:$0xff] (!%p1833_p7)  ;;  %v1512_v48 = vld [vmem:[#allocation10 + $0x160] sm:$0xff] (!%p1833_p7) }
 0x1d0   : > { %v788_v56 = vadd.f32 %v1911_v55, %v1876_v53  ;;  %v1488_v53 = vld [vmem:[#allocation10 + $0xa0] sm:$0xff] (!%p1833_p7)  ;;  %v2550_v55 = vpack.c.bf16 (!%p1833_p7), %v1503_v52, %v1502_v50  ;;  %v1513_v52 = vld [vmem:[#allocation10 + $0x168] sm:$0xff] (!%p1833_p7) }
 0x1eb   : > { %v1944_v57 = vpop.f32.mrb[2].mxu0 }
 0x1ec   : > { %v1945_v58 = vpop.f32.mrb[3].mxu0  ;;  %v1979_v59 = vpop.f32.mrb[2].mxu1 }
 0x1ed   : > { %v1946_v60 = vadd.f32 %v1945_v58, %v1944_v57  ;;  %v1980_v61 = vpop.f32.mrb[3].mxu1  ;;  %v1472_v57 = vld [vmem:[#allocation10 + $0x20] sm:$0xff] (!%p1833_p7)  ;;  %v1473_v58 = vld [vmem:[#allocation10 + $0x28] sm:$0xff] (!%p1833_p7) }
 0x1ee   : > { %v1981_v62 = vadd.f32 %v1980_v61, %v1979_v59  ;;  %v1520_v59 = vld [vmem:[#allocation10 + $0x1a0] sm:$0xff] (!%p1833_p7) }
 0x1ef   : > { %v858_v63 = vadd.f32 %v1946_v60, %v788_v56  ;;  %v2520_v56 = vpack.c.bf16 (!%p1833_p7), %v1489_v54, %v1488_v53  ;;  %v1521_v60 = vld [vmem:[#allocation10 + $0x1a8] sm:$0xff] (!%p1833_p7)  ;;  %v1504_v61 = vld [vmem:[#allocation10 + $0x120] sm:$0xff] (!%p1833_p7)  ;;  %v1438_v54 = vld [vmem:[#allocation9] sm:$0xf] (!%p1833_p7) }
 0x1f1   : > { %v928_v0 = vadd.f32 %v1981_v62, %v858_v63  ;;  %v1505_v62 = vld [vmem:[#allocation10 + $0x128] sm:$0xff] (!%p1833_p7)  ;;  %v2522_v63 = vpack.c.bf16 (!%p1833_p7), %v1473_v58, %v1472_v57  ;;  %v1499_v57 = vld [vmem:[#allocation10 + $0xf8] sm:$0xff] (!%p1833_p7) }
 0x20b   : > { %v2014_v1 = vpop.f32.mrb[4].mxu0 }
 0x20c   : > { %v2015_v2 = vpop.f32.mrb[5].mxu0  ;;  %v2049_v3 = vpop.f32.mrb[4].mxu1 }
 0x20d   : > { %v2016_v4 = vadd.f32 %v2015_v2, %v2014_v1  ;;  %v2050_v5 = vpop.f32.mrb[5].mxu1  ;;  %v1490_v1 = vld [vmem:[#allocation10 + $0xb0] sm:$0xff] (!%p1833_p7)  ;;  %v1491_v2 = vld [vmem:[#allocation10 + $0xb8] sm:$0xff] (!%p1833_p7) }
 0x20e   : > { %v2051_v6 = vadd.f32 %v2050_v5, %v2049_v3  ;;  %v1474_v3 = vld [vmem:[#allocation10 + $0x30] sm:$0xff] (!%p1833_p7)  ;;  %v2524_v5 = vpack.c.bf16 (!%p1833_p7), %v1491_v2, %v1490_v1 }
 0x20f   : > { %v998_v7 = vadd.f32 %v2016_v4, %v928_v0  ;;  %v2552_v0 = vpack.c.bf16 (!%p1833_p7), %v1521_v60, %v1520_v59  ;;  %v2554_v4 = vpack.c.bf16 (!%p1833_p7), %v1505_v62, %v1504_v61  ;;  %v1530_v61 = vld [vmem:[#allocation10 + $0x1f0] sm:$0xff] (!%p1833_p7)  ;;  %v1531_v62 = vld [vmem:[#allocation10 + $0x1f8] sm:$0xff] (!%p1833_p7) }
 0x211   : > { %v1068_v8 = vadd.f32 %v2051_v6, %v998_v7  ;;  %v1475_v6 = vld [vmem:[#allocation10 + $0x38] sm:$0xff] (!%p1833_p7)  ;;  %v1522_v7 = vld [vmem:[#allocation10 + $0x1b0] sm:$0xff] (!%p1833_p7) }
 0x22b   : > { %v2084_v9 = vpop.f32.mrb[6].mxu0 }
 0x22c   : > { %v2085_v10 = vpop.f32.mrb[7].mxu0  ;;  %v2119_v11 = vpop.f32.mrb[6].mxu1 }
 0x22d   : > { %v2086_v12 = vadd.f32 %v2085_v10, %v2084_v9  ;;  %v2120_v13 = vpop.f32.mrb[7].mxu1  ;;  %v1506_v10 = vld [vmem:[#allocation10 + $0x130] sm:$0xff] (!%p1833_p7) }
 0x22e   : > { %v2121_v14 = vadd.f32 %v2120_v13, %v2119_v11  ;;  %v1507_v11 = vld [vmem:[#allocation10 + $0x138] sm:$0xff] (!%p1833_p7)  ;;  %v1440_v13 = vlaneseq (!%p1833_p7) }
 0x22f   : > { %v1138_v15 = vadd.f32 %v2086_v12, %v1068_v8  ;;  %v1523_v8 = vld [vmem:[#allocation10 + $0x1b8] sm:$0xff] (!%p1833_p7)  ;;  %v1492_v12 = vld [vmem:[#allocation10 + $0xc0] sm:$0xff] (!%p1833_p7) }
 0x230   : > { %v2556_v9 = vpack.c.bf16 (!%p1833_p7), %v1523_v8, %v1522_v7  ;;  %v1482_v7 = vld [vmem:[#allocation10 + $0x70] sm:$0xff] (!%p1833_p7)  ;;  %v1483_v8 = vld [vmem:[#allocation10 + $0x78] sm:$0xff] (!%p1833_p7) }
 0x231   : > { %v1208_v16 = vadd.f32 %v2121_v14, %v1138_v15  ;;  %v1493_v14 = vld [vmem:[#allocation10 + $0xc8] sm:$0xff] (!%p1833_p7)  ;;  %v2526_v15 = vpack.c.bf16 (!%p1833_p7), %v1475_v6, %v1474_v3 }
 0x233   : > { %v1211_v17 = vmul.f32 0.0625, %v1208_v16  ;;  %v1524_v16 = vld [vmem:[#allocation10 + $0x1c0] sm:$0xff] (!%p1833_p7) }
 0x235   : > { %1345 = vmatmul.mubr.f32.vlgmr.msra.gmra.mrb[8].mxu0 %v1211_v17  ;;  %1416 = vmatmul.mubr.f32.vlgmr.msra.gmra.mrb[8].mxu1 %v1211_v17  ;;  %v1525_v17 = vld [vmem:[#allocation10 + $0x1c8] sm:$0xff] (!%p1833_p7) }
 0x236   : > { %2515 = vmatpush3.bf16.msra.mxu0 (!%p1833_p7), %v2514_v37  ;;  %2547 = vmatpush3.bf16.msra.mxu1 (!%p1833_p7), %v2546_v42  ;;  %v1511_v37 = vld [vmem:[#allocation10 + $0x158] sm:$0xff] (!%p1833_p7)  ;;  %v1528_v42 = vld [vmem:[#allocation10 + $0x1e0] sm:$0xff] (!%p1833_p7) }
 0x237   : > { %2517 = vmatprep.subr.bf16.mxu0 (!%p1833_p7), %v2516_v46  ;;  %2549 = vmatprep.subr.bf16.mxu1 (!%p1833_p7), %v2548_v51  ;;  %v1480_v46 = vld [vmem:[#allocation10 + $0x60] sm:$0xff] (!%p1833_p7)  ;;  %v2566_v50 = vpack.c.bf16 (!%p1833_p7), %v1511_v37, %v1510_v35  ;;  %v2536_v51 = vpack.c.bf16 (!%p1833_p7), %v1497_v39, %v1496_v38 }
 0x23a   : > { %2519 = vmatpush3.bf16.msra.mxu0 (!%p1833_p7), %v2518_v47  ;;  %2551 = vmatpush3.bf16.msra.mxu1 (!%p1833_p7), %v2550_v55  ;;  %v1481_v47 = vld [vmem:[#allocation10 + $0x68] sm:$0xff] (!%p1833_p7)  ;;  %v2568_v55 = vpack.c.bf16 (!%p1833_p7), %v1529_v43, %v1528_v42 }
 0x23b   : > { %2521 = vmatprep.subr.bf16.mxu0 (!%p1833_p7), %v2520_v56  ;;  %2553 = vmatprep.subr.bf16.mxu1 (!%p1833_p7), %v2552_v0  ;;  %v1498_v56 = vld [vmem:[#allocation10 + $0xf0] sm:$0xff] (!%p1833_p7)  ;;  %v2538_v0 = vpack.c.bf16 (!%p1833_p7), %v1481_v47, %v1480_v46 }
 0x23c   : > { %v2540_v6 = vpack.c.bf16 (!%p1833_p7), %v1499_v57, %v1498_v56 }
 0x23e   : > { %2523 = vmatpush3.bf16.msra.mxu0 (!%p1833_p7), %v2522_v63  ;;  %2555 = vmatpush3.bf16.msra.mxu1 (!%p1833_p7), %v2554_v4 }
 0x23f   : > { %2525 = vmatprep.subr.bf16.mxu0 (!%p1833_p7), %v2524_v5  ;;  %2557 = vmatprep.subr.bf16.mxu1 (!%p1833_p7), %v2556_v9  ;;  %v2570_v5 = vpack.c.bf16 (!%p1833_p7), %v1513_v52, %v1512_v48 }
 0x242   : > { %2527 = vmatpush3.bf16.msra.mxu0 (!%p1833_p7), %v2526_v15 }
 0x306   : > { %1433 = sbr.rel (%p1833_p7) target bundleno = 1016 (0x3f8), region = 76 }
 0x308   : > { %v1346_v22 = vpop.f32.mrb[8].mxu0  ;;  %v1417_v23 = vpop.f32.mrb[8].mxu1 }
 0x309   : > { %v1422_v24 = vadd.f32 %v1346_v22, %v1212_v18  ;;  %v1424_v25 = vadd.f32 %v1417_v23, %v1214_v19  ;;  %v1348_v26 = vpop.f32.mrb[9].mxu0  ;;  %v1419_v27 = vpop.f32.mrb[9].mxu1  ;;  %v2558_v18 = vpack.c.bf16 (!%p1833_p7), %v1507_v11, %v1506_v10  ;;  %v2528_v19 = vpack.c.bf16 (!%p1833_p7), %v1493_v14, %v1492_v12  ;;  %v1508_v22 = vld [vmem:[#allocation10 + $0x140] sm:$0xff] (!%p1833_p7)  ;;  %v1514_v11 = vld [vmem:[#allocation10 + $0x170] sm:$0xff] (!%p1833_p7)  ;;  %v1515_v12 = vld [vmem:[#allocation10 + $0x178] sm:$0xff] (!%p1833_p7) }
 0x30a   : > { %v1423_v28 = vadd.f32 %v1348_v26, %v1213_v20  ;;  %v1425_v29 = vadd.f32 %v1419_v27, %v1215_v21  ;;  %v1476_v20 = vld [vmem:[#allocation10 + $0x40] sm:$0xff] (!%p1833_p7)  ;;  %v1477_v21 = vld [vmem:[#allocation10 + $0x48] sm:$0xff] (!%p1833_p7)  ;;  %v2560_v23 = vpack.c.bf16 (!%p1833_p7), %v1525_v17, %v1524_v16  ;;  %v1495_v26 = vld [vmem:[#allocation10 + $0xd8] sm:$0xff] (!%p1833_p7)  ;;  %v1441_v27 = vshrl.u32 (!%p1833_p7), %v1440_v13, 7 }
 0x30b   : > { %1426 = vst [vmem:[#allocation2] sm:$0xff] %v1422_v24  ;;  %1428 = vst [vmem:[#allocation2 + $0x10] sm:$0xff] %v1424_v25  ;;  %v1509_v24 = vld [vmem:[#allocation10 + $0x148] sm:$0xff] (!%p1833_p7)  ;;  %v1494_v25 = vld [vmem:[#allocation10 + $0xd0] sm:$0xff] (!%p1833_p7)  ;;  %v2530_v30 = vpack.c.bf16 (!%p1833_p7), %v1477_v21, %v1476_v20  ;;  %2559 = vmatpush3.bf16.msra.mxu1 (!%p1833_p7), %v2558_v18  ;;  %2529 = vmatprep.subr.bf16.mxu0 (!%p1833_p7), %v2528_v19  ;;  %v2572_v10 = vpack.c.bf16 (!%p1833_p7), %v1531_v62, %v1530_v61 }
 0x30c   : > { %1427 = vst [vmem:[#allocation2 + $0x8] sm:$0xff] %v1423_v28  ;;  %1429 = vst [vmem:[#allocation2 + $0x18] sm:$0xff] %v1425_v29  ;;  %v1526_v28 = vld [vmem:[#allocation10 + $0x1d0] sm:$0xff] (!%p1833_p7)  ;;  %v1527_v29 = vld [vmem:[#allocation10 + $0x1d8] sm:$0xff] (!%p1833_p7)  ;;  %v2562_v31 = vpack.c.bf16 (!%p1833_p7), %v1509_v24, %v1508_v22  ;;  %v2532_v32 = vpack.c.bf16 (!%p1833_p7), %v1495_v26, %v1494_v25  ;;  %2561 = vmatprep.subr.bf16.mxu1 (!%p1833_p7), %v2560_v23  ;;  %v1446_v40 = vsub.s32 (!%p1833_p7), 1, %v1441_v27  ;;  %v1454_v41 = vsub.s32 (!%p1833_p7), 3, %v1441_v27 }
 0x30d   : > { %v2564_v36 = vpack.c.bf16 %v1527_v29, %v1526_v28  ;;  %v1442_v44 = vsub.s32 0, %v1441_v27  ;;  %2531 = vmatpush3.bf16.msra.mxu0 %v2530_v30  ;;  %v1450_v49 = vsub.s32 2, %v1441_v27  ;;  %v2542_v16 = vpack.c.bf16 %v1483_v8, %v1482_v7  ;;  %v1834_v22 = vld [vmem:[#allocation12] ss:$0 sm:$0xff] }
 0x30e   : > { %2533 = vmatprep.subr.bf16.mxu0 %v2532_v32  ;;  %v1447_v58 = vrot.slane %v1438_v54, %v1446_v40  ;;  %v1455_v60 = vrot.slane %v1438_v54, %v1454_v41  ;;  %v2574_v18 = vpack.c.bf16 %v1515_v12, %v1514_v11 }
 0x30f   : > { %2563 = vmatpush3.bf16.msra.mxu1 %v2562_v31  ;;  %v1443_v63 = vrot.slane %v1438_v54, %v1442_v44  ;;  %v1451_v4 = vrot.slane %v1438_v54, %v1450_v49 }
 0x310   : > { %2565 = vmatprep.subr.bf16.mxu1 %v2564_v36 }
 0x311   : > { %2535 = vmatpush3.bf16.msra.mxu0 %v2534_v45 }
 0x312   : > { %v1434_v2 = vld [vmem:[#allocation2] sm:$0xff]  ;;  %2537 = vmatprep.subr.bf16.mxu0 %v2536_v51  ;;  %v1436_v9 = vld [vmem:[#allocation2 + $0x10] sm:$0xff] }
 0x313   : > { %v1435_v53 = vld [vmem:[#allocation2 + $0x8] sm:$0xff]  ;;  %v1437_v59 = vld [vmem:[#allocation2 + $0x18] sm:$0xff]  ;;  %2567 = vmatpush3.bf16.msra.mxu1 %v2566_v50  ;;  %v1460_v15 = vadd.f32 %v1443_v63, %v1434_v2  ;;  %v1462_v17 = vadd.f32 %v1451_v4, %v1436_v9 }
 0x314   : > { %v1461_v1 = vadd.f32 %v1447_v58, %v1435_v53  ;;  %v1463_v3 = vadd.f32 %v1455_v60, %v1437_v59  ;;  %2569 = vmatprep.subr.bf16.mxu1 %v2568_v55 }
 0x315   : > { %2539 = vmatpush3.bf16.msra.mxu0 %v2538_v0  ;;  %v1464_v19 = vmax.f32 %v1460_v15, 0.0  ;;  %v1466_v20 = vmax.f32 %v1462_v17, 0.0 }
 0x316   : > { %v1465_v13 = vmax.f32 %v1461_v1, 0.0  ;;  %v1467_v14 = vmax.f32 %v1463_v3, 0.0  ;;  %2541 = vmatprep.subr.bf16.mxu0 %v2540_v6 }
 0x317   : > { %2571 = vmatpush3.bf16.msra.mxu1 %v2570_v5 }
 0x318   : > { %1603 = vmatprep.mubr.f32.mxu0 %v1465_v13  ;;  %2573 = vmatprep.subr.bf16.mxu1 %v2572_v10 }
 0x319   : > { %1673 = vmatprep.mubr.f32.mxu1 %v1467_v14  ;;  %2543 = vmatpush3.bf16.msra.mxu0 %v2542_v16 }
 0x31b   : > { %2575 = vmatpush3.bf16.msra.mxu1 %v2574_v18 }
 0x31c   : > { %1604 = vmatmul.mubr.f32.vlgmr.msra.gmra.mrb[0].mxu0 %v1464_v19 }
 0x31e   : > { %1674 = vmatmul.mubr.f32.vlgmr.msra.gmra.mrb[0].mxu1 %v1466_v20 }
 0x3ef   : > { %v2154_v21 = vpop.f32.mrb[0].mxu0 }
 0x3f0   : > { %v2155_v23 = vpop.f32.mrb[1].mxu0 }
 0x3f1   : > { %v2189_v24 = vpop.f32.mrb[0].mxu1  ;;  %v2156_v25 = vadd.f32 %v2155_v23, %v2154_v21 }
 0x3f2   : > { %v2190_v26 = vpop.f32.mrb[1].mxu1 }
 0x3f3   : > { %v2191_v27 = vadd.f32 %v2190_v26, %v2189_v24  ;;  %v1606_v28 = vadd.f32 %v2156_v25, %v1834_v22 }
 0x3f5   : > { %v1676_v29 = vadd.f32 %v2191_v27, %v1606_v28 }
 0x3f7   : > { %1679 = vst [vmem:[#allocation13] sm:$0xff] %v1676_v29 }
 0x3f8 PF: > { %p2629_p11 = scmp.eq.s32.totalorder %s3039_s27, 15  ;;  %s2972_s24 = smov [#allocation13]  }
 0x3f9   : > { %s1689_s12 = sshll.u32 %s2972_s24, 4  ;;  %s1690_s12 = int_to_ptr.vmem [resolvable:$true] %s1689_s12 }
 0x3fa   : > { %s2862_s16 = scalar_lea.vmem %s1690_s12, 128  ;;  %p2869_p10 = scmp.lt.s32.totalorder %s1690_s12, %s1690_s12 }
 0x3fb   : > { %p2863_p1 = scmp.ne.s32.totalorder %s1690_s12, %s2862_s16  ;;  %p2870_p13 = scmp.lt.s32.totalorder %s2862_s16, %s2862_s16 }
 0x3fd   : > { %p2864_p0 = pnand %p2863_p1, %p2629_p11  ;;  %p2871_p2 = por %p2870_p13, %p2869_p10 }
 0x3ff   : > { %p2865_p12 = pneg %p2864_p0 }
 0x401   : > { %p2872_p4 = pnand %p2871_p2, %p2865_p12 }
 0x403   : > { %2875 = shalt.err (!%p2872_p4)
}
 0x404   : > { %s2876_s18 = scalar_lea.hbm %s3402_s6, 128 }
 0x405   : > { %p2877_p6 = scmp.ne.s32.totalorder %s3402_s6, %s2876_s18  ;;  %p2882_p8 = scmp.lt.u32.totalorder %s2876_s18, %s3402_s6 }
 0x407   : > { %p2878_p3 = pnand %p2877_p6, %p2629_p11 }
 0x409   : > { %p2879_p5 = pneg %p2878_p3 }
 0x40b   : > { %p2884_p9 = pnand %p2882_p8, %p2879_p5 }
 0x40d   : > { %2887 = shalt.err (!%p2884_p9)
}
 0x40e   : > { %2597 = dma.vmem_to_hbm [thread:$0]  (%p2629_p11), %s1690_s12, 128, %s3402_s6, [#allocation5]  }
 0x40f   : > { %2933 = dma.done.wait (%p2629_p11), [#allocation5], 128  }
 0x410   : > { %2935 = vsyncadd (%p2629_p11), [#allocation5], 4294967168 }
 0x411 PF: > { %s22_s26 = sadd.s32 1, %s2958_s26   ;;  %s3439_s10 = sld [smem:[#allocation21_spill]] }
 0x412   : > { %p19_p7 = scmp.ge.s32.totalorder %s22_s26, 18   ;;  %s3440_s0 = sld [smem:[#allocation20_spill]] }
 0x413   : > { %s3441_s21 = smov %s2942_s22  ;;  %s3442_s22 = smov %s2946_s23 }
 0x414   : > { %s3444_s24 = smov %s2954_s25  ;;  %21 = sbr.rel (!%p19_p7) target bundleno = 11 (0xb), region = 117 }
 0x417   : > { %s3443_s23 = smov %s3439_s10 }
 0x418   : > { %s3445_s25 = smov %s3440_s0 }
 0x41b   :  { %1702 = vsyncpa [#allocation4], 1 }
 0x41c   :  { %1704 = vsyncpa [#allocation4 + $0x1], 1 }
 0x41d   :  { %1705 = vsyncpa [#allocation7], 1 }
 0x41e   :  { %1706 = vsyncpa [#allocation11], 1 }
 0x41f   :  { %1707 = vsyncpa [#allocation5], 1 }
 0x420   :  { %1709 = vsyncpa [#allocation5 + $0x1], 1 }

</bundles_post_ra>
